<compile_context>
chip_gen: v7x
topology: tpu7x:2x2x1
jax: 0.10.0
libtpu: 0.0.40
codegen_flags: <defaults>
</compile_context>

<pallas_src>
import jax
import jax.numpy as jnp
from jax import lax
from jax.experimental import pallas as pl
from jax.experimental.pallas import tpu as pltpu


def _round_up(x, m):
    return (x + m - 1) // m * m


# ----------------------------------------------------------------------------
# Kernel: one LSTM direction (selected by pl.program_id(0)) with the input
# projection hoisted and the output Linear fused into the recurrence.
# ----------------------------------------------------------------------------
def _lstm_dir_kernel(x_ref,        # (T, Bp, nInp)   bf16  (time-major, shared)
                     wih_ref,      # (nInp, 4Hp)     bf16  (this direction)
                     whh_ref,      # (Hp, 4Hp)       bf16
                     b_ref,        # (1, 4Hp)        f32   (b_ih + b_hh)
                     wlin_ref,     # (Hp, nOutp)     bf16  (this direction's Linear half)
                     out_ref,      # (T, Bp, nOutp)  f32   (this direction's contribution)
                     gx_ref):      # scratch: (T, Bp, 4Hp) f32
    T, B, nIn = x_ref.shape
    H = whh_ref.shape[0]
    d = pl.program_id(0)           # 0 = forward, 1 = backward

    # ---- Hoisted input projection: one big MXU matmul, bias folded once. ----
    x2d = x_ref[...].reshape(T * B, nIn)
    gx = jnp.dot(x2d, wih_ref[...], preferred_element_type=jnp.float32) + b_ref[...]
    gx_ref[...] = gx.reshape(T, B, 4 * H)

    whh = whh_ref[...]
    wlin = wlin_ref[...]

    def step(i, carry):
        h, c = carry
        t = jnp.where(d == 0, i, T - 1 - i)
        gates = gx_ref[t] + jnp.dot(h.astype(whh.dtype), whh,
                                    preferred_element_type=jnp.float32)
        # Hp is a multiple of 128 -> gate slices are lane-aligned.
        i_g = jax.nn.sigmoid(gates[:, 0 * H:1 * H])
        f_g = jax.nn.sigmoid(gates[:, 1 * H:2 * H])
        g_g = jnp.tanh(gates[:, 2 * H:3 * H])
        o_g = jax.nn.sigmoid(gates[:, 3 * H:4 * H])
        c_new = f_g * c + i_g * g_g
        h_new = o_g * jnp.tanh(c_new)
        # Fused output Linear: this direction's half of nn.Linear(2H, nOut).
        out_ref[t] = jnp.dot(h_new.astype(wlin.dtype), wlin,
                             preferred_element_type=jnp.float32)
        return (h_new, c_new)

    h0 = jnp.zeros((B, H), jnp.float32)
    unroll = T if T <= 16 else 4
    lax.fori_loop(0, T, step, (h0, h0), unroll=unroll)


# ----------------------------------------------------------------------------
# Wrapper: padding to hardware tiles, weight packing, pallas_call, unpadding.
# ----------------------------------------------------------------------------
def _pad_gate_cols(w, H, Hp):
    """Pad the 4H gate axis [i|f|g|o] per-gate so slices stay aligned."""
    lead = w.shape[:-1]
    w4 = w.reshape(lead + (4, H))
    w4 = jnp.pad(w4, [(0, 0)] * len(lead) + [(0, 0), (0, Hp - H)])
    return w4.reshape(lead + (4 * Hp,))


def bidirectional_lstm(x, params, mxu_dtype=jnp.bfloat16):
    """x: (B, T, nIn) float32, batch_first like the PyTorch module."""
    B, T, nIn = x.shape
    H = params["whh_f"].shape[0]
    nOut = params["blin"].shape[-1]

    Bp = _round_up(B, 8)
    Hp = _round_up(H, 128)
    nInp = _round_up(nIn, 128)
    nOutp = _round_up(nOut, 128)

    # Zero-padding keeps padded hidden lanes exactly 0 through the recurrence
    # (gate preactivation 0 -> c stays 0 -> h stays 0) and padded output lanes
    # contribute nothing; the wrapper slices them off.
    xp = jnp.pad(x, ((0, Bp - B), (0, 0), (0, nInp - nIn)))
    x_tm = jnp.transpose(xp, (1, 0, 2)).astype(mxu_dtype)     # (T, Bp, nInp)
    # TODO(synk): for very long sequences, stream x / gate projections over a
    # T-chunk grid axis instead of keeping the whole sequence VMEM-resident.

    def pad_dir(wih, whh, b, wlin_half):
        wih = jnp.pad(_pad_gate_cols(wih, H, Hp), ((0, nInp - nIn), (0, 0)))
        whh = jnp.pad(_pad_gate_cols(whh, H, Hp), ((0, Hp - H), (0, 0)))
        b = _pad_gate_cols(b, H, Hp)
        wlin_half = jnp.pad(wlin_half, ((0, Hp - H), (0, nOutp - nOut)))
        return wih, whh, b, wlin_half

    wih_f, whh_f, b_f, wlin_f = pad_dir(params["wih_f"], params["whh_f"],
                                        params["b_f"], params["wlin"][:H, :])
    wih_b, whh_b, b_b, wlin_b = pad_dir(params["wih_b"], params["whh_b"],
                                        params["b_b"], params["wlin"][H:, :])

    wih_pair = jnp.stack([wih_f, wih_b]).astype(mxu_dtype)     # (2, nInp, 4Hp)
    whh_pair = jnp.stack([whh_f, whh_b]).astype(mxu_dtype)     # (2, Hp, 4Hp)
    b_pair = jnp.stack([b_f, b_b]).astype(jnp.float32)         # (2, 1, 4Hp)
    wlin_pair = jnp.stack([wlin_f, wlin_b]).astype(mxu_dtype)  # (2, Hp, nOutp)

    out_pair = pl.pallas_call(
        _lstm_dir_kernel,
        out_shape=jax.ShapeDtypeStruct((2, T, Bp, nOutp), jnp.float32),
        grid_spec=pltpu.PrefetchScalarGridSpec(
            num_scalar_prefetch=0,
            grid=(2,),                                          # fwd / bwd direction
            in_specs=[
                pl.BlockSpec((T, Bp, nInp), lambda d: (0, 0, 0)),
                pl.BlockSpec((None, nInp, 4 * Hp), lambda d: (d, 0, 0)),
                pl.BlockSpec((None, Hp, 4 * Hp), lambda d: (d, 0, 0)),
                pl.BlockSpec((None, 1, 4 * Hp), lambda d: (d, 0, 0)),
                pl.BlockSpec((None, Hp, nOutp), lambda d: (d, 0, 0)),
            ],
            out_specs=pl.BlockSpec((None, T, Bp, nOutp), lambda d: (d, 0, 0, 0)),
            scratch_shapes=[pltpu.VMEM((T, Bp, 4 * Hp), jnp.float32)],
        ),
        compiler_params=pltpu.CompilerParams(
            dimension_semantics=("parallel",),                  # 2 TCs on v7x
            vmem_limit_bytes=64 * 1024 * 1024,
        ),
    )(x_tm, wih_pair, whh_pair, b_pair, wlin_pair)

    out_tm = out_pair[0] + out_pair[1]                          # (T, Bp, nOutp)
    out = jnp.transpose(out_tm[:, :B, :nOut], (1, 0, 2))        # (B, T, nOut)
    return out + params["blin"]


# ----------------------------------------------------------------------------
# Pure-JAX reference (lax.scan, f32) for correctness checking
# ----------------------------------------------------------------------------
def reference_bilstm(x, params):
    B, T, nIn = x.shape
    H = params["whh_f"].shape[0]

    def run(x_tm, wih, whh, b):
        def scan_fn(carry, x_t):
            h, c = carry
            gates = x_t @ wih + h @ whh + b
            i, f, g, o = jnp.split(gates, 4, axis=-1)
            i = jax.nn.sigmoid(i)
            f = jax.nn.sigmoid(f)
            g = jnp.tanh(g)
            o = jax.nn.sigmoid(o)
            c = f * c + i * g
            h = o * jnp.tanh(c)
            return (h, c), h

        h0 = jnp.zeros((B, H), jnp.float32)
        _, hs = lax.scan(scan_fn, (h0, h0), x_tm)
        return hs

    x_tm = jnp.transpose(x, (1, 0, 2))
    hs_f = run(x_tm, params["wih_f"], params["whh_f"], params["b_f"])
    hs_b = run(x_tm[::-1], params["wih_b"], params["whh_b"], params["b_b"])[::-1]
    rec = jnp.concatenate([hs_f, hs_b], axis=-1)          # (T, B, 2H)
    out = rec @ params["wlin"] + params["blin"]
    return jnp.transpose(out, (1, 0, 2))


# ----------------------------------------------------------------------------
# Deterministic parameter construction (shapes follow nn.LSTM / nn.Linear)
# ----------------------------------------------------------------------------
def make_params(key, nIn, nHidden, nOut):
    ks = jax.random.split(key, 9)
    s = 0.1
    # PyTorch stores weight_ih as (4H, nIn); we keep the transposed (nIn, 4H)
    # layout for right-multiplication.  b_* is the sum of b_ih + b_hh.
    return {
        "wih_f": s * jax.random.normal(ks[0], (nIn, 4 * nHidden), jnp.float32),
        "whh_f": s * jax.random.normal(ks[1], (nHidden, 4 * nHidden), jnp.float32),
        "b_f":   s * jax.random.normal(ks[2], (1, 4 * nHidden), jnp.float32),
        "wih_b": s * jax.random.normal(ks[3], (nIn, 4 * nHidden), jnp.float32),
        "whh_b": s * jax.random.normal(ks[4], (nHidden, 4 * nHidden), jnp.float32),
        "b_b":   s * jax.random.normal(ks[5], (1, 4 * nHidden), jnp.float32),
        "wlin":  s * jax.random.normal(ks[6], (2 * nHidden, nOut), jnp.float32),
        "blin":  s * jax.random.normal(ks[7], (1, nOut), jnp.float32),
    }


if __name__ == "__main__":
    B, T, nIn, nHidden, nOut = 2, 8, 16, 32, 8

    key = jax.random.PRNGKey(0)
    kx, kp = jax.random.split(key)
    x = jax.random.normal(kx, (B, T, nIn), jnp.float32)
    params = make_params(kp, nIn, nHidden, nOut)

    out = jax.jit(bidirectional_lstm)(x, params)
    out = jax.block_until_ready(out)

    ref = jax.block_until_ready(reference_bilstm(x, params))
    assert out.shape == (B, T, nOut)
    # bf16 MXU operands (f32 accumulation) -> loosened tolerance vs f32 reference.
    assert jnp.allclose(out, ref, atol=2e-2, rtol=2e-2), \
        f"max abs err {jnp.max(jnp.abs(out - ref))}"

    print("KERNEL_OK")
</pallas_src>

<mosaic_0001>
module attributes {stable_mosaic.version = 11 : i64} {
  func.func @_lstm_dir_kernel(%arg0: i32, %arg1: memref<8x8x128xbf16, #tpu.memory_space<vmem>>, %arg2: memref<1x128x512xbf16, #tpu.memory_space<vmem>>, %arg3: memref<1x128x512xbf16, #tpu.memory_space<vmem>>, %arg4: memref<1x1x512xf32, #tpu.memory_space<vmem>>, %arg5: memref<1x128x128xbf16, #tpu.memory_space<vmem>>, %arg6: memref<1x8x8x128xf32, #tpu.memory_space<vmem>>, %arg7: memref<8x8x512xf32, #tpu.memory_space<vmem>>) attributes {dimension_semantics = [#tpu.dimension_semantics<parallel>], iteration_bounds = array<i64: 2>, scalar_prefetch = 0 : i64, scratch_operands = 1 : i64, tpu.core_type = #tpu.core_type<tc>, window_params = [{pipeline_mode = #tpu.pipeline_mode<synchronous>, transform_indices = @transform_0, window_bounds = array<i64: 8, 8, 128>}, {transform_indices = @transform_1, window_bounds = array<i64: 1, 128, 512>}, {transform_indices = @transform_2, window_bounds = array<i64: 1, 128, 512>}, {transform_indices = @transform_3, window_bounds = array<i64: 1, 1, 512>}, {transform_indices = @transform_4, window_bounds = array<i64: 1, 128, 128>}, {transform_indices = @transform_5, window_bounds = array<i64: 1, 8, 8, 128>}]} {
    %c0 = arith.constant 0 : index
    %c0_0 = arith.constant 0 : index
    %c0_1 = arith.constant 0 : index
    %0 = vector.load %arg1[%c0, %c0_0, %c0_1] : memref<8x8x128xbf16, #tpu.memory_space<vmem>>, vector<8x8x128xbf16>
    %1 = vector.shape_cast %0 : vector<8x8x128xbf16> to vector<64x128xbf16>
    %c0_2 = arith.constant 0 : index
    %c0_3 = arith.constant 0 : index
    %c0_4 = arith.constant 0 : index
    %2 = vector.load %arg2[%c0_2, %c0_3, %c0_4] : memref<1x128x512xbf16, #tpu.memory_space<vmem>>, vector<1x128x512xbf16>
    %3 = vector.shape_cast %2 : vector<1x128x512xbf16> to vector<128x512xbf16>
    %cst = arith.constant dense<0.000000e+00> : vector<64x512xf32>
    %4 = tpu.matmul %1, %3, %cst {dimension_numbers = #tpu.dot_dimension_numbers<[1], [0], [0], [1], [0, 0, 1, 1], [], []>} : vector<64x128xbf16>, vector<128x512xbf16>, vector<64x512xf32> -> vector<64x512xf32>
    %c0_5 = arith.constant 0 : index
    %c0_6 = arith.constant 0 : index
    %c0_7 = arith.constant 0 : index
    %5 = vector.load %arg4[%c0_5, %c0_6, %c0_7] : memref<1x1x512xf32, #tpu.memory_space<vmem>>, vector<1x1x512xf32>
    %6 = vector.shape_cast %5 : vector<1x1x512xf32> to vector<1x512xf32>
    %7 = vector.broadcast %6 : vector<1x512xf32> to vector<64x512xf32>
    %8 = arith.addf %4, %7 : vector<64x512xf32>
    %9 = vector.shape_cast %8 : vector<64x512xf32> to vector<8x8x512xf32>
    %c0_8 = arith.constant 0 : index
    %c0_9 = arith.constant 0 : index
    %c0_10 = arith.constant 0 : index
    %10 = vector.load %arg7[%c0_8, %c0_9, %c0_10] : memref<8x8x512xf32, #tpu.memory_space<vmem>>, vector<8x8x512xf32>
    tpu.vector_store %arg7[%c0_8, %c0_9, %c0_10], %9 {strides = array<i32>} : memref<8x8x512xf32, #tpu.memory_space<vmem>>, vector<8x8x512xf32>,
    %c0_11 = arith.constant 0 : index
    %c0_12 = arith.constant 0 : index
    %c0_13 = arith.constant 0 : index
    %11 = vector.load %arg3[%c0_11, %c0_12, %c0_13] : memref<1x128x512xbf16, #tpu.memory_space<vmem>>, vector<1x128x512xbf16>
    %12 = vector.shape_cast %11 : vector<1x128x512xbf16> to vector<128x512xbf16>
    %c0_14 = arith.constant 0 : index
    %c0_15 = arith.constant 0 : index
    %c0_16 = arith.constant 0 : index
    %13 = vector.load %arg5[%c0_14, %c0_15, %c0_16] : memref<1x128x128xbf16, #tpu.memory_space<vmem>>, vector<1x128x128xbf16>
    %14 = vector.shape_cast %13 : vector<1x128x128xbf16> to vector<128x128xbf16>
    %cst_17 = arith.constant 0.000000e+00 : f32
    %15 = vector.broadcast %cst_17 : f32 to vector<8x128xf32>
    %c0_i32 = arith.constant 0 : i32
    %c0_i32_18 = arith.constant 0 : i32
    %16 = arith.cmpi eq, %arg0, %c0_i32_18 : i32
    %c7_i32 = arith.constant 7 : i32
    %17 = arith.subi %c7_i32, %c0_i32 : i32
    %18 = arith.select %16, %c0_i32, %17 : i32
    %19 = arith.index_cast %18 : i32 to index
    %c0_19 = arith.constant 0 : index
    %c0_20 = arith.constant 0 : index
    %20 = vector.load %arg7[%19, %c0_19, %c0_20] : memref<8x8x512xf32, #tpu.memory_space<vmem>>, vector<1x8x512xf32>
    %21 = vector.shape_cast %20 : vector<1x8x512xf32> to vector<8x512xf32>
    %22 = arith.truncf %15 : vector<8x128xf32> to vector<8x128xbf16>
    %cst_21 = arith.constant dense<0.000000e+00> : vector<8x512xf32>
    %23 = tpu.matmul %22, %12, %cst_21 {dimension_numbers = #tpu.dot_dimension_numbers<[1], [0], [0], [1], [0, 0, 1, 1], [], []>} : vector<8x128xbf16>, vector<128x512xbf16>, vector<8x512xf32> -> vector<8x512xf32>
    %24 = arith.addf %21, %23 : vector<8x512xf32>
    %25 = vector.extract_strided_slice %24 {offsets = [0, 0], sizes = [8, 128], strides = [1, 1]} : vector<8x512xf32> to vector<8x128xf32>
    %26 = arith.negf %25 : vector<8x128xf32>
    %27 = math.exp %26 : vector<8x128xf32>
    %cst_22 = arith.constant 1.000000e+00 : f32
    %28 = vector.broadcast %cst_22 : f32 to vector<8x128xf32>
    %29 = arith.addf %28, %27 : vector<8x128xf32>
    %30 = arith.divf %28, %29 : vector<8x128xf32>
    %31 = vector.extract_strided_slice %24 {offsets = [0, 128], sizes = [8, 128], strides = [1, 1]} : vector<8x512xf32> to vector<8x128xf32>
    %32 = arith.negf %31 : vector<8x128xf32>
    %33 = math.exp %32 : vector<8x128xf32>
    %cst_23 = arith.constant 1.000000e+00 : f32
    %34 = vector.broadcast %cst_23 : f32 to vector<8x128xf32>
    %35 = arith.addf %34, %33 : vector<8x128xf32>
    %36 = arith.divf %34, %35 : vector<8x128xf32>
    %37 = vector.extract_strided_slice %24 {offsets = [0, 256], sizes = [8, 128], strides = [1, 1]} : vector<8x512xf32> to vector<8x128xf32>
    %38 = math.tanh %37 : vector<8x128xf32>
    %39 = vector.extract_strided_slice %24 {offsets = [0, 384], sizes = [8, 128], strides = [1, 1]} : vector<8x512xf32> to vector<8x128xf32>
    %40 = arith.negf %39 : vector<8x128xf32>
    %41 = math.exp %40 : vector<8x128xf32>
    %cst_24 = arith.constant 1.000000e+00 : f32
    %42 = vector.broadcast %cst_24 : f32 to vector<8x128xf32>
    %43 = arith.addf %42, %41 : vector<8x128xf32>
    %44 = arith.divf %42, %43 : vector<8x128xf32>
    %45 = arith.mulf %36, %15 : vector<8x128xf32>
    %46 = arith.mulf %30, %38 : vector<8x128xf32>
    %47 = arith.addf %45, %46 : vector<8x128xf32>
    %48 = math.tanh %47 : vector<8x128xf32>
    %49 = arith.mulf %44, %48 : vector<8x128xf32>
    %50 = arith.truncf %49 : vector<8x128xf32> to vector<8x128xbf16>
    %cst_25 = arith.constant dense<0.000000e+00> : vector<8x128xf32>
    %51 = tpu.matmul %50, %14, %cst_25 {dimension_numbers = #tpu.dot_dimension_numbers<[1], [0], [0], [1], [0, 0, 1, 1], [], []>} : vector<8x128xbf16>, vector<128x128xbf16>, vector<8x128xf32> -> vector<8x128xf32>
    %c0_26 = arith.constant 0 : index
    %52 = arith.index_cast %18 : i32 to index
    %c0_27 = arith.constant 0 : index
    %c0_28 = arith.constant 0 : index
    %53 = vector.load %arg6[%c0_26, %52, %c0_27, %c0_28] : memref<1x8x8x128xf32, #tpu.memory_space<vmem>>, vector<1x1x8x128xf32>
    %54 = vector.shape_cast %53 : vector<1x1x8x128xf32> to vector<8x128xf32>
    %55 = vector.shape_cast %51 : vector<8x128xf32> to vector<1x1x8x128xf32>
    tpu.vector_store %arg6[%c0_26, %52, %c0_27, %c0_28], %55 {strides = array<i32>} : memref<1x8x8x128xf32, #tpu.memory_space<vmem>>, vector<1x1x8x128xf32>,
    %c1_i32 = arith.constant 1 : i32
    %c0_i32_29 = arith.constant 0 : i32
    %56 = arith.cmpi eq, %arg0, %c0_i32_29 : i32
    %c7_i32_30 = arith.constant 7 : i32
    %57 = arith.subi %c7_i32_30, %c1_i32 : i32
    %58 = arith.select %56, %c1_i32, %57 : i32
    %59 = arith.index_cast %58 : i32 to index
    %c0_31 = arith.constant 0 : index
    %c0_32 = arith.constant 0 : index
    %60 = vector.load %arg7[%59, %c0_31, %c0_32] : memref<8x8x512xf32, #tpu.memory_space<vmem>>, vector<1x8x512xf32>
    %61 = vector.shape_cast %60 : vector<1x8x512xf32> to vector<8x512xf32>
    %62 = arith.truncf %49 : vector<8x128xf32> to vector<8x128xbf16>
    %cst_33 = arith.constant dense<0.000000e+00> : vector<8x512xf32>
    %63 = tpu.matmul %62, %12, %cst_33 {dimension_numbers = #tpu.dot_dimension_numbers<[1], [0], [0], [1], [0, 0, 1, 1], [], []>} : vector<8x128xbf16>, vector<128x512xbf16>, vector<8x512xf32> -> vector<8x512xf32>
    %64 = arith.addf %61, %63 : vector<8x512xf32>
    %65 = vector.extract_strided_slice %64 {offsets = [0, 0], sizes = [8, 128], strides = [1, 1]} : vector<8x512xf32> to vector<8x128xf32>
    %66 = arith.negf %65 : vector<8x128xf32>
    %67 = math.exp %66 : vector<8x128xf32>
    %cst_34 = arith.constant 1.000000e+00 : f32
    %68 = vector.broadcast %cst_34 : f32 to vector<8x128xf32>
    %69 = arith.addf %68, %67 : vector<8x128xf32>
    %70 = arith.divf %68, %69 : vector<8x128xf32>
    %71 = vector.extract_strided_slice %64 {offsets = [0, 128], sizes = [8, 128], strides = [1, 1]} : vector<8x512xf32> to vector<8x128xf32>
    %72 = arith.negf %71 : vector<8x128xf32>
    %73 = math.exp %72 : vector<8x128xf32>
    %cst_35 = arith.constant 1.000000e+00 : f32
    %74 = vector.broadcast %cst_35 : f32 to vector<8x128xf32>
    %75 = arith.addf %74, %73 : vector<8x128xf32>
    %76 = arith.divf %74, %75 : vector<8x128xf32>
    %77 = vector.extract_strided_slice %64 {offsets = [0, 256], sizes = [8, 128], strides = [1, 1]} : vector<8x512xf32> to vector<8x128xf32>
    %78 = math.tanh %77 : vector<8x128xf32>
    %79 = vector.extract_strided_slice %64 {offsets = [0, 384], sizes = [8, 128], strides = [1, 1]} : vector<8x512xf32> to vector<8x128xf32>
    %80 = arith.negf %79 : vector<8x128xf32>
    %81 = math.exp %80 : vector<8x128xf32>
    %cst_36 = arith.constant 1.000000e+00 : f32
    %82 = vector.broadcast %cst_36 : f32 to vector<8x128xf32>
    %83 = arith.addf %82, %81 : vector<8x128xf32>
    %84 = arith.divf %82, %83 : vector<8x128xf32>
    %85 = arith.mulf %76, %47 : vector<8x128xf32>
    %86 = arith.mulf %70, %78 : vector<8x128xf32>
    %87 = arith.addf %85, %86 : vector<8x128xf32>
    %88 = math.tanh %87 : vector<8x128xf32>
    %89 = arith.mulf %84, %88 : vector<8x128xf32>
    %90 = arith.truncf %89 : vector<8x128xf32> to vector<8x128xbf16>
    %cst_37 = arith.constant dense<0.000000e+00> : vector<8x128xf32>
    %91 = tpu.matmul %90, %14, %cst_37 {dimension_numbers = #tpu.dot_dimension_numbers<[1], [0], [0], [1], [0, 0, 1, 1], [], []>} : vector<8x128xbf16>, vector<128x128xbf16>, vector<8x128xf32> -> vector<8x128xf32>
    %c0_38 = arith.constant 0 : index
    %92 = arith.index_cast %58 : i32 to index
    %c0_39 = arith.constant 0 : index
    %c0_40 = arith.constant 0 : index
    %93 = vector.load %arg6[%c0_38, %92, %c0_39, %c0_40] : memref<1x8x8x128xf32, #tpu.memory_space<vmem>>, vector<1x1x8x128xf32>
    %94 = vector.shape_cast %93 : vector<1x1x8x128xf32> to vector<8x128xf32>
    %95 = vector.shape_cast %91 : vector<8x128xf32> to vector<1x1x8x128xf32>
    tpu.vector_store %arg6[%c0_38, %92, %c0_39, %c0_40], %95 {strides = array<i32>} : memref<1x8x8x128xf32, #tpu.memory_space<vmem>>, vector<1x1x8x128xf32>,
    %c2_i32 = arith.constant 2 : i32
    %c0_i32_41 = arith.constant 0 : i32
    %96 = arith.cmpi eq, %arg0, %c0_i32_41 : i32
    %c7_i32_42 = arith.constant 7 : i32
    %97 = arith.subi %c7_i32_42, %c2_i32 : i32
    %98 = arith.select %96, %c2_i32, %97 : i32
    %99 = arith.index_cast %98 : i32 to index
    %c0_43 = arith.constant 0 : index
    %c0_44 = arith.constant 0 : index
    %100 = vector.load %arg7[%99, %c0_43, %c0_44] : memref<8x8x512xf32, #tpu.memory_space<vmem>>, vector<1x8x512xf32>
    %101 = vector.shape_cast %100 : vector<1x8x512xf32> to vector<8x512xf32>
    %102 = arith.truncf %89 : vector<8x128xf32> to vector<8x128xbf16>
    %cst_45 = arith.constant dense<0.000000e+00> : vector<8x512xf32>
    %103 = tpu.matmul %102, %12, %cst_45 {dimension_numbers = #tpu.dot_dimension_numbers<[1], [0], [0], [1], [0, 0, 1, 1], [], []>} : vector<8x128xbf16>, vector<128x512xbf16>, vector<8x512xf32> -> vector<8x512xf32>
    %104 = arith.addf %101, %103 : vector<8x512xf32>
    %105 = vector.extract_strided_slice %104 {offsets = [0, 0], sizes = [8, 128], strides = [1, 1]} : vector<8x512xf32> to vector<8x128xf32>
    %106 = arith.negf %105 : vector<8x128xf32>
    %107 = math.exp %106 : vector<8x128xf32>
    %cst_46 = arith.constant 1.000000e+00 : f32
    %108 = vector.broadcast %cst_46 : f32 to vector<8x128xf32>
    %109 = arith.addf %108, %107 : vector<8x128xf32>
    %110 = arith.divf %108, %109 : vector<8x128xf32>
    %111 = vector.extract_strided_slice %104 {offsets = [0, 128], sizes = [8, 128], strides = [1, 1]} : vector<8x512xf32> to vector<8x128xf32>
    %112 = arith.negf %111 : vector<8x128xf32>
    %113 = math.exp %112 : vector<8x128xf32>
    %cst_47 = arith.constant 1.000000e+00 : f32
    %114 = vector.broadcast %cst_47 : f32 to vector<8x128xf32>
    %115 = arith.addf %114, %113 : vector<8x128xf32>
    %116 = arith.divf %114, %115 : vector<8x128xf32>
    %117 = vector.extract_strided_slice %104 {offsets = [0, 256], sizes = [8, 128], strides = [1, 1]} : vector<8x512xf32> to vector<8x128xf32>
    %118 = math.tanh %117 : vector<8x128xf32>
    %119 = vector.extract_strided_slice %104 {offsets = [0, 384], sizes = [8, 128], strides = [1, 1]} : vector<8x512xf32> to vector<8x128xf32>
    %120 = arith.negf %119 : vector<8x128xf32>
    %121 = math.exp %120 : vector<8x128xf32>
    %cst_48 = arith.constant 1.000000e+00 : f32
    %122 = vector.broadcast %cst_48 : f32 to vector<8x128xf32>
    %123 = arith.addf %122, %121 : vector<8x128xf32>
    %124 = arith.divf %122, %123 : vector<8x128xf32>
    %125 = arith.mulf %116, %87 : vector<8x128xf32>
    %126 = arith.mulf %110, %118 : vector<8x128xf32>
    %127 = arith.addf %125, %126 : vector<8x128xf32>
    %128 = math.tanh %127 : vector<8x128xf32>
    %129 = arith.mulf %124, %128 : vector<8x128xf32>
    %130 = arith.truncf %129 : vector<8x128xf32> to vector<8x128xbf16>
    %cst_49 = arith.constant dense<0.000000e+00> : vector<8x128xf32>
    %131 = tpu.matmul %130, %14, %cst_49 {dimension_numbers = #tpu.dot_dimension_numbers<[1], [0], [0], [1], [0, 0, 1, 1], [], []>} : vector<8x128xbf16>, vector<128x128xbf16>, vector<8x128xf32> -> vector<8x128xf32>
    %c0_50 = arith.constant 0 : index
    %132 = arith.index_cast %98 : i32 to index
    %c0_51 = arith.constant 0 : index
    %c0_52 = arith.constant 0 : index
    %133 = vector.load %arg6[%c0_50, %132, %c0_51, %c0_52] : memref<1x8x8x128xf32, #tpu.memory_space<vmem>>, vector<1x1x8x128xf32>
    %134 = vector.shape_cast %133 : vector<1x1x8x128xf32> to vector<8x128xf32>
    %135 = vector.shape_cast %131 : vector<8x128xf32> to vector<1x1x8x128xf32>
    tpu.vector_store %arg6[%c0_50, %132, %c0_51, %c0_52], %135 {strides = array<i32>} : memref<1x8x8x128xf32, #tpu.memory_space<vmem>>, vector<1x1x8x128xf32>,
    %c3_i32 = arith.constant 3 : i32
    %c0_i32_53 = arith.constant 0 : i32
    %136 = arith.cmpi eq, %arg0, %c0_i32_53 : i32
    %c7_i32_54 = arith.constant 7 : i32
    %137 = arith.subi %c7_i32_54, %c3_i32 : i32
    %138 = arith.select %136, %c3_i32, %137 : i32
    %139 = arith.index_cast %138 : i32 to index
    %c0_55 = arith.constant 0 : index
    %c0_56 = arith.constant 0 : index
    %140 = vector.load %arg7[%139, %c0_55, %c0_56] : memref<8x8x512xf32, #tpu.memory_space<vmem>>, vector<1x8x512xf32>
    %141 = vector.shape_cast %140 : vector<1x8x512xf32> to vector<8x512xf32>
    %142 = arith.truncf %129 : vector<8x128xf32> to vector<8x128xbf16>
    %cst_57 = arith.constant dense<0.000000e+00> : vector<8x512xf32>
    %143 = tpu.matmul %142, %12, %cst_57 {dimension_numbers = #tpu.dot_dimension_numbers<[1], [0], [0], [1], [0, 0, 1, 1], [], []>} : vector<8x128xbf16>, vector<128x512xbf16>, vector<8x512xf32> -> vector<8x512xf32>
    %144 = arith.addf %141, %143 : vector<8x512xf32>
    %145 = vector.extract_strided_slice %144 {offsets = [0, 0], sizes = [8, 128], strides = [1, 1]} : vector<8x512xf32> to vector<8x128xf32>
    %146 = arith.negf %145 : vector<8x128xf32>
    %147 = math.exp %146 : vector<8x128xf32>
    %cst_58 = arith.constant 1.000000e+00 : f32
    %148 = vector.broadcast %cst_58 : f32 to vector<8x128xf32>
    %149 = arith.addf %148, %147 : vector<8x128xf32>
    %150 = arith.divf %148, %149 : vector<8x128xf32>
    %151 = vector.extract_strided_slice %144 {offsets = [0, 128], sizes = [8, 128], strides = [1, 1]} : vector<8x512xf32> to vector<8x128xf32>
    %152 = arith.negf %151 : vector<8x128xf32>
    %153 = math.exp %152 : vector<8x128xf32>
    %cst_59 = arith.constant 1.000000e+00 : f32
    %154 = vector.broadcast %cst_59 : f32 to vector<8x128xf32>
    %155 = arith.addf %154, %153 : vector<8x128xf32>
    %156 = arith.divf %154, %155 : vector<8x128xf32>
    %157 = vector.extract_strided_slice %144 {offsets = [0, 256], sizes = [8, 128], strides = [1, 1]} : vector<8x512xf32> to vector<8x128xf32>
    %158 = math.tanh %157 : vector<8x128xf32>
    %159 = vector.extract_strided_slice %144 {offsets = [0, 384], sizes = [8, 128], strides = [1, 1]} : vector<8x512xf32> to vector<8x128xf32>
    %160 = arith.negf %159 : vector<8x128xf32>
    %161 = math.exp %160 : vector<8x128xf32>
    %cst_60 = arith.constant 1.000000e+00 : f32
    %162 = vector.broadcast %cst_60 : f32 to vector<8x128xf32>
    %163 = arith.addf %162, %161 : vector<8x128xf32>
    %164 = arith.divf %162, %163 : vector<8x128xf32>
    %165 = arith.mulf %156, %127 : vector<8x128xf32>
    %166 = arith.mulf %150, %158 : vector<8x128xf32>
    %167 = arith.addf %165, %166 : vector<8x128xf32>
    %168 = math.tanh %167 : vector<8x128xf32>
    %169 = arith.mulf %164, %168 : vector<8x128xf32>
    %170 = arith.truncf %169 : vector<8x128xf32> to vector<8x128xbf16>
    %cst_61 = arith.constant dense<0.000000e+00> : vector<8x128xf32>
    %171 = tpu.matmul %170, %14, %cst_61 {dimension_numbers = #tpu.dot_dimension_numbers<[1], [0], [0], [1], [0, 0, 1, 1], [], []>} : vector<8x128xbf16>, vector<128x128xbf16>, vector<8x128xf32> -> vector<8x128xf32>
    %c0_62 = arith.constant 0 : index
    %172 = arith.index_cast %138 : i32 to index
    %c0_63 = arith.constant 0 : index
    %c0_64 = arith.constant 0 : index
    %173 = vector.load %arg6[%c0_62, %172, %c0_63, %c0_64] : memref<1x8x8x128xf32, #tpu.memory_space<vmem>>, vector<1x1x8x128xf32>
    %174 = vector.shape_cast %173 : vector<1x1x8x128xf32> to vector<8x128xf32>
    %175 = vector.shape_cast %171 : vector<8x128xf32> to vector<1x1x8x128xf32>
    tpu.vector_store %arg6[%c0_62, %172, %c0_63, %c0_64], %175 {strides = array<i32>} : memref<1x8x8x128xf32, #tpu.memory_space<vmem>>, vector<1x1x8x128xf32>,
    %c4_i32 = arith.constant 4 : i32
    %c0_i32_65 = arith.constant 0 : i32
    %176 = arith.cmpi eq, %arg0, %c0_i32_65 : i32
    %c7_i32_66 = arith.constant 7 : i32
    %177 = arith.subi %c7_i32_66, %c4_i32 : i32
    %178 = arith.select %176, %c4_i32, %177 : i32
    %179 = arith.index_cast %178 : i32 to index
    %c0_67 = arith.constant 0 : index
    %c0_68 = arith.constant 0 : index
    %180 = vector.load %arg7[%179, %c0_67, %c0_68] : memref<8x8x512xf32, #tpu.memory_space<vmem>>, vector<1x8x512xf32>
    %181 = vector.shape_cast %180 : vector<1x8x512xf32> to vector<8x512xf32>
    %182 = arith.truncf %169 : vector<8x128xf32> to vector<8x128xbf16>
    %cst_69 = arith.constant dense<0.000000e+00> : vector<8x512xf32>
    %183 = tpu.matmul %182, %12, %cst_69 {dimension_numbers = #tpu.dot_dimension_numbers<[1], [0], [0], [1], [0, 0, 1, 1], [], []>} : vector<8x128xbf16>, vector<128x512xbf16>, vector<8x512xf32> -> vector<8x512xf32>
    %184 = arith.addf %181, %183 : vector<8x512xf32>
    %185 = vector.extract_strided_slice %184 {offsets = [0, 0], sizes = [8, 128], strides = [1, 1]} : vector<8x512xf32> to vector<8x128xf32>
    %186 = arith.negf %185 : vector<8x128xf32>
    %187 = math.exp %186 : vector<8x128xf32>
    %cst_70 = arith.constant 1.000000e+00 : f32
    %188 = vector.broadcast %cst_70 : f32 to vector<8x128xf32>
    %189 = arith.addf %188, %187 : vector<8x128xf32>
    %190 = arith.divf %188, %189 : vector<8x128xf32>
    %191 = vector.extract_strided_slice %184 {offsets = [0, 128], sizes = [8, 128], strides = [1, 1]} : vector<8x512xf32> to vector<8x128xf32>
    %192 = arith.negf %191 : vector<8x128xf32>
    %193 = math.exp %192 : vector<8x128xf32>
    %cst_71 = arith.constant 1.000000e+00 : f32
    %194 = vector.broadcast %cst_71 : f32 to vector<8x128xf32>
    %195 = arith.addf %194, %193 : vector<8x128xf32>
    %196 = arith.divf %194, %195 : vector<8x128xf32>
    %197 = vector.extract_strided_slice %184 {offsets = [0, 256], sizes = [8, 128], strides = [1, 1]} : vector<8x512xf32> to vector<8x128xf32>
    %198 = math.tanh %197 : vector<8x128xf32>
    %199 = vector.extract_strided_slice %184 {offsets = [0, 384], sizes = [8, 128], strides = [1, 1]} : vector<8x512xf32> to vector<8x128xf32>
    %200 = arith.negf %199 : vector<8x128xf32>
    %201 = math.exp %200 : vector<8x128xf32>
    %cst_72 = arith.constant 1.000000e+00 : f32
    %202 = vector.broadcast %cst_72 : f32 to vector<8x128xf32>
    %203 = arith.addf %202, %201 : vector<8x128xf32>
    %204 = arith.divf %202, %203 : vector<8x128xf32>
    %205 = arith.mulf %196, %167 : vector<8x128xf32>
    %206 = arith.mulf %190, %198 : vector<8x128xf32>
    %207 = arith.addf %205, %206 : vector<8x128xf32>
    %208 = math.tanh %207 : vector<8x128xf32>
    %209 = arith.mulf %204, %208 : vector<8x128xf32>
    %210 = arith.truncf %209 : vector<8x128xf32> to vector<8x128xbf16>
    %cst_73 = arith.constant dense<0.000000e+00> : vector<8x128xf32>
    %211 = tpu.matmul %210, %14, %cst_73 {dimension_numbers = #tpu.dot_dimension_numbers<[1], [0], [0], [1], [0, 0, 1, 1], [], []>} : vector<8x128xbf16>, vector<128x128xbf16>, vector<8x128xf32> -> vector<8x128xf32>
    %c0_74 = arith.constant 0 : index
    %212 = arith.index_cast %178 : i32 to index
    %c0_75 = arith.constant 0 : index
    %c0_76 = arith.constant 0 : index
    %213 = vector.load %arg6[%c0_74, %212, %c0_75, %c0_76] : memref<1x8x8x128xf32, #tpu.memory_space<vmem>>, vector<1x1x8x128xf32>
    %214 = vector.shape_cast %213 : vector<1x1x8x128xf32> to vector<8x128xf32>
    %215 = vector.shape_cast %211 : vector<8x128xf32> to vector<1x1x8x128xf32>
    tpu.vector_store %arg6[%c0_74, %212, %c0_75, %c0_76], %215 {strides = array<i32>} : memref<1x8x8x128xf32, #tpu.memory_space<vmem>>, vector<1x1x8x128xf32>,
    %c5_i32 = arith.constant 5 : i32
    %c0_i32_77 = arith.constant 0 : i32
    %216 = arith.cmpi eq, %arg0, %c0_i32_77 : i32
    %c7_i32_78 = arith.constant 7 : i32
    %217 = arith.subi %c7_i32_78, %c5_i32 : i32
    %218 = arith.select %216, %c5_i32, %217 : i32
    %219 = arith.index_cast %218 : i32 to index
    %c0_79 = arith.constant 0 : index
    %c0_80 = arith.constant 0 : index
    %220 = vector.load %arg7[%219, %c0_79, %c0_80] : memref<8x8x512xf32, #tpu.memory_space<vmem>>, vector<1x8x512xf32>
    %221 = vector.shape_cast %220 : vector<1x8x512xf32> to vector<8x512xf32>
    %222 = arith.truncf %209 : vector<8x128xf32> to vector<8x128xbf16>
    %cst_81 = arith.constant dense<0.000000e+00> : vector<8x512xf32>
    %223 = tpu.matmul %222, %12, %cst_81 {dimension_numbers = #tpu.dot_dimension_numbers<[1], [0], [0], [1], [0, 0, 1, 1], [], []>} : vector<8x128xbf16>, vector<128x512xbf16>, vector<8x512xf32> -> vector<8x512xf32>
    %224 = arith.addf %221, %223 : vector<8x512xf32>
    %225 = vector.extract_strided_slice %224 {offsets = [0, 0], sizes = [8, 128], strides = [1, 1]} : vector<8x512xf32> to vector<8x128xf32>
    %226 = arith.negf %225 : vector<8x128xf32>
    %227 = math.exp %226 : vector<8x128xf32>
    %cst_82 = arith.constant 1.000000e+00 : f32
    %228 = vector.broadcast %cst_82 : f32 to vector<8x128xf32>
    %229 = arith.addf %228, %227 : vector<8x128xf32>
    %230 = arith.divf %228, %229 : vector<8x128xf32>
    %231 = vector.extract_strided_slice %224 {offsets = [0, 128], sizes = [8, 128], strides = [1, 1]} : vector<8x512xf32> to vector<8x128xf32>
    %232 = arith.negf %231 : vector<8x128xf32>
    %233 = math.exp %232 : vector<8x128xf32>
    %cst_83 = arith.constant 1.000000e+00 : f32
    %234 = vector.broadcast %cst_83 : f32 to vector<8x128xf32>
    %235 = arith.addf %234, %233 : vector<8x128xf32>
    %236 = arith.divf %234, %235 : vector<8x128xf32>
    %237 = vector.extract_strided_slice %224 {offsets = [0, 256], sizes = [8, 128], strides = [1, 1]} : vector<8x512xf32> to vector<8x128xf32>
    %238 = math.tanh %237 : vector<8x128xf32>
    %239 = vector.extract_strided_slice %224 {offsets = [0, 384], sizes = [8, 128], strides = [1, 1]} : vector<8x512xf32> to vector<8x128xf32>
    %240 = arith.negf %239 : vector<8x128xf32>
    %241 = math.exp %240 : vector<8x128xf32>
    %cst_84 = arith.constant 1.000000e+00 : f32
    %242 = vector.broadcast %cst_84 : f32 to vector<8x128xf32>
    %243 = arith.addf %242, %241 : vector<8x128xf32>
    %244 = arith.divf %242, %243 : vector<8x128xf32>
    %245 = arith.mulf %236, %207 : vector<8x128xf32>
    %246 = arith.mulf %230, %238 : vector<8x128xf32>
    %247 = arith.addf %245, %246 : vector<8x128xf32>
    %248 = math.tanh %247 : vector<8x128xf32>
    %249 = arith.mulf %244, %248 : vector<8x128xf32>
    %250 = arith.truncf %249 : vector<8x128xf32> to vector<8x128xbf16>
    %cst_85 = arith.constant dense<0.000000e+00> : vector<8x128xf32>
    %251 = tpu.matmul %250, %14, %cst_85 {dimension_numbers = #tpu.dot_dimension_numbers<[1], [0], [0], [1], [0, 0, 1, 1], [], []>} : vector<8x128xbf16>, vector<128x128xbf16>, vector<8x128xf32> -> vector<8x128xf32>
    %c0_86 = arith.constant 0 : index
    %252 = arith.index_cast %218 : i32 to index
    %c0_87 = arith.constant 0 : index
    %c0_88 = arith.constant 0 : index
    %253 = vector.load %arg6[%c0_86, %252, %c0_87, %c0_88] : memref<1x8x8x128xf32, #tpu.memory_space<vmem>>, vector<1x1x8x128xf32>
    %254 = vector.shape_cast %253 : vector<1x1x8x128xf32> to vector<8x128xf32>
    %255 = vector.shape_cast %251 : vector<8x128xf32> to vector<1x1x8x128xf32>
    tpu.vector_store %arg6[%c0_86, %252, %c0_87, %c0_88], %255 {strides = array<i32>} : memref<1x8x8x128xf32, #tpu.memory_space<vmem>>, vector<1x1x8x128xf32>,
    %c6_i32 = arith.constant 6 : i32
    %c0_i32_89 = arith.constant 0 : i32
    %256 = arith.cmpi eq, %arg0, %c0_i32_89 : i32
    %c7_i32_90 = arith.constant 7 : i32
    %257 = arith.subi %c7_i32_90, %c6_i32 : i32
    %258 = arith.select %256, %c6_i32, %257 : i32
    %259 = arith.index_cast %258 : i32 to index
    %c0_91 = arith.constant 0 : index
    %c0_92 = arith.constant 0 : index
    %260 = vector.load %arg7[%259, %c0_91, %c0_92] : memref<8x8x512xf32, #tpu.memory_space<vmem>>, vector<1x8x512xf32>
    %261 = vector.shape_cast %260 : vector<1x8x512xf32> to vector<8x512xf32>
    %262 = arith.truncf %249 : vector<8x128xf32> to vector<8x128xbf16>
    %cst_93 = arith.constant dense<0.000000e+00> : vector<8x512xf32>
    %263 = tpu.matmul %262, %12, %cst_93 {dimension_numbers = #tpu.dot_dimension_numbers<[1], [0], [0], [1], [0, 0, 1, 1], [], []>} : vector<8x128xbf16>, vector<128x512xbf16>, vector<8x512xf32> -> vector<8x512xf32>
    %264 = arith.addf %261, %263 : vector<8x512xf32>
    %265 = vector.extract_strided_slice %264 {offsets = [0, 0], sizes = [8, 128], strides = [1, 1]} : vector<8x512xf32> to vector<8x128xf32>
    %266 = arith.negf %265 : vector<8x128xf32>
    %267 = math.exp %266 : vector<8x128xf32>
    %cst_94 = arith.constant 1.000000e+00 : f32
    %268 = vector.broadcast %cst_94 : f32 to vector<8x128xf32>
    %269 = arith.addf %268, %267 : vector<8x128xf32>
    %270 = arith.divf %268, %269 : vector<8x128xf32>
    %271 = vector.extract_strided_slice %264 {offsets = [0, 128], sizes = [8, 128], strides = [1, 1]} : vector<8x512xf32> to vector<8x128xf32>
    %272 = arith.negf %271 : vector<8x128xf32>
    %273 = math.exp %272 : vector<8x128xf32>
    %cst_95 = arith.constant 1.000000e+00 : f32
    %274 = vector.broadcast %cst_95 : f32 to vector<8x128xf32>
    %275 = arith.addf %274, %273 : vector<8x128xf32>
    %276 = arith.divf %274, %275 : vector<8x128xf32>
    %277 = vector.extract_strided_slice %264 {offsets = [0, 256], sizes = [8, 128], strides = [1, 1]} : vector<8x512xf32> to vector<8x128xf32>
    %278 = math.tanh %277 : vector<8x128xf32>
    %279 = vector.extract_strided_slice %264 {offsets = [0, 384], sizes = [8, 128], strides = [1, 1]} : vector<8x512xf32> to vector<8x128xf32>
    %280 = arith.negf %279 : vector<8x128xf32>
    %281 = math.exp %280 : vector<8x128xf32>
    %cst_96 = arith.constant 1.000000e+00 : f32
    %282 = vector.broadcast %cst_96 : f32 to vector<8x128xf32>
    %283 = arith.addf %282, %281 : vector<8x128xf32>
    %284 = arith.divf %282, %283 : vector<8x128xf32>
    %285 = arith.mulf %276, %247 : vector<8x128xf32>
    %286 = arith.mulf %270, %278 : vector<8x128xf32>
    %287 = arith.addf %285, %286 : vector<8x128xf32>
    %288 = math.tanh %287 : vector<8x128xf32>
    %289 = arith.mulf %284, %288 : vector<8x128xf32>
    %290 = arith.truncf %289 : vector<8x128xf32> to vector<8x128xbf16>
    %cst_97 = arith.constant dense<0.000000e+00> : vector<8x128xf32>
    %291 = tpu.matmul %290, %14, %cst_97 {dimension_numbers = #tpu.dot_dimension_numbers<[1], [0], [0], [1], [0, 0, 1, 1], [], []>} : vector<8x128xbf16>, vector<128x128xbf16>, vector<8x128xf32> -> vector<8x128xf32>
    %c0_98 = arith.constant 0 : index
    %292 = arith.index_cast %258 : i32 to index
    %c0_99 = arith.constant 0 : index
    %c0_100 = arith.constant 0 : index
    %293 = vector.load %arg6[%c0_98, %292, %c0_99, %c0_100] : memref<1x8x8x128xf32, #tpu.memory_space<vmem>>, vector<1x1x8x128xf32>
    %294 = vector.shape_cast %293 : vector<1x1x8x128xf32> to vector<8x128xf32>
    %295 = vector.shape_cast %291 : vector<8x128xf32> to vector<1x1x8x128xf32>
    tpu.vector_store %arg6[%c0_98, %292, %c0_99, %c0_100], %295 {strides = array<i32>} : memref<1x8x8x128xf32, #tpu.memory_space<vmem>>, vector<1x1x8x128xf32>,
    %c7_i32_101 = arith.constant 7 : i32
    %c0_i32_102 = arith.constant 0 : i32
    %296 = arith.cmpi eq, %arg0, %c0_i32_102 : i32
    %c7_i32_103 = arith.constant 7 : i32
    %297 = arith.subi %c7_i32_103, %c7_i32_101 : i32
    %298 = arith.select %296, %c7_i32_101, %297 : i32
    %299 = arith.index_cast %298 : i32 to index
    %c0_104 = arith.constant 0 : index
    %c0_105 = arith.constant 0 : index
    %300 = vector.load %arg7[%299, %c0_104, %c0_105] : memref<8x8x512xf32, #tpu.memory_space<vmem>>, vector<1x8x512xf32>
    %301 = vector.shape_cast %300 : vector<1x8x512xf32> to vector<8x512xf32>
    %302 = arith.truncf %289 : vector<8x128xf32> to vector<8x128xbf16>
    %cst_106 = arith.constant dense<0.000000e+00> : vector<8x512xf32>
    %303 = tpu.matmul %302, %12, %cst_106 {dimension_numbers = #tpu.dot_dimension_numbers<[1], [0], [0], [1], [0, 0, 1, 1], [], []>} : vector<8x128xbf16>, vector<128x512xbf16>, vector<8x512xf32> -> vector<8x512xf32>
    %304 = arith.addf %301, %303 : vector<8x512xf32>
    %305 = vector.extract_strided_slice %304 {offsets = [0, 0], sizes = [8, 128], strides = [1, 1]} : vector<8x512xf32> to vector<8x128xf32>
    %306 = arith.negf %305 : vector<8x128xf32>
    %307 = math.exp %306 : vector<8x128xf32>
    %cst_107 = arith.constant 1.000000e+00 : f32
    %308 = vector.broadcast %cst_107 : f32 to vector<8x128xf32>
    %309 = arith.addf %308, %307 : vector<8x128xf32>
    %310 = arith.divf %308, %309 : vector<8x128xf32>
    %311 = vector.extract_strided_slice %304 {offsets = [0, 128], sizes = [8, 128], strides = [1, 1]} : vector<8x512xf32> to vector<8x128xf32>
    %312 = arith.negf %311 : vector<8x128xf32>
    %313 = math.exp %312 : vector<8x128xf32>
    %cst_108 = arith.constant 1.000000e+00 : f32
    %314 = vector.broadcast %cst_108 : f32 to vector<8x128xf32>
    %315 = arith.addf %314, %313 : vector<8x128xf32>
    %316 = arith.divf %314, %315 : vector<8x128xf32>
    %317 = vector.extract_strided_slice %304 {offsets = [0, 256], sizes = [8, 128], strides = [1, 1]} : vector<8x512xf32> to vector<8x128xf32>
    %318 = math.tanh %317 : vector<8x128xf32>
    %319 = vector.extract_strided_slice %304 {offsets = [0, 384], sizes = [8, 128], strides = [1, 1]} : vector<8x512xf32> to vector<8x128xf32>
    %320 = arith.negf %319 : vector<8x128xf32>
    %321 = math.exp %320 : vector<8x128xf32>
    %cst_109 = arith.constant 1.000000e+00 : f32
    %322 = vector.broadcast %cst_109 : f32 to vector<8x128xf32>
    %323 = arith.addf %322, %321 : vector<8x128xf32>
    %324 = arith.divf %322, %323 : vector<8x128xf32>
    %325 = arith.mulf %316, %287 : vector<8x128xf32>
    %326 = arith.mulf %310, %318 : vector<8x128xf32>
    %327 = arith.addf %325, %326 : vector<8x128xf32>
    %328 = math.tanh %327 : vector<8x128xf32>
    %329 = arith.mulf %324, %328 : vector<8x128xf32>
    %330 = arith.truncf %329 : vector<8x128xf32> to vector<8x128xbf16>
    %cst_110 = arith.constant dense<0.000000e+00> : vector<8x128xf32>
    %331 = tpu.matmul %330, %14, %cst_110 {dimension_numbers = #tpu.dot_dimension_numbers<[1], [0], [0], [1], [0, 0, 1, 1], [], []>} : vector<8x128xbf16>, vector<128x128xbf16>, vector<8x128xf32> -> vector<8x128xf32>
    %c0_111 = arith.constant 0 : index
    %332 = arith.index_cast %298 : i32 to index
    %c0_112 = arith.constant 0 : index
    %c0_113 = arith.constant 0 : index
    %333 = vector.load %arg6[%c0_111, %332, %c0_112, %c0_113] : memref<1x8x8x128xf32, #tpu.memory_space<vmem>>, vector<1x1x8x128xf32>
    %334 = vector.shape_cast %333 : vector<1x1x8x128xf32> to vector<8x128xf32>
    %335 = vector.shape_cast %331 : vector<8x128xf32> to vector<1x1x8x128xf32>
    tpu.vector_store %arg6[%c0_111, %332, %c0_112, %c0_113], %335 {strides = array<i32>} : memref<1x8x8x128xf32, #tpu.memory_space<vmem>>, vector<1x1x8x128xf32>,
    %c8_i32 = arith.constant 8 : i32
    return
  }
  func.func @transform_0(%arg0: i32) -> (i32, i32, i32) {
    %c0_i32 = arith.constant 0 : i32
    %c0_i32_0 = arith.constant 0 : i32
    %c0_i32_1 = arith.constant 0 : i32
    %c0_i32_2 = arith.constant 0 : i32
    return %c0_i32, %c0_i32_0, %c0_i32_1 : i32, i32, i32
  }
  func.func @transform_1(%arg0: i32) -> (i32, i32, i32) {
    %c0_i32 = arith.constant 0 : i32
    %c0_i32_0 = arith.constant 0 : i32
    %c0_i32_1 = arith.constant 0 : i32
    return %arg0, %c0_i32, %c0_i32_0 : i32, i32, i32
  }
  func.func @transform_2(%arg0: i32) -> (i32, i32, i32) {
    %c0_i32 = arith.constant 0 : i32
    %c0_i32_0 = arith.constant 0 : i32
    %c0_i32_1 = arith.constant 0 : i32
    return %arg0, %c0_i32, %c0_i32_0 : i32, i32, i32
  }
  func.func @transform_3(%arg0: i32) -> (i32, i32, i32) {
    %c0_i32 = arith.constant 0 : i32
    %c0_i32_0 = arith.constant 0 : i32
    %c0_i32_1 = arith.constant 0 : i32
    return %arg0, %c0_i32, %c0_i32_0 : i32, i32, i32
  }
  func.func @transform_4(%arg0: i32) -> (i32, i32, i32) {
    %c0_i32 = arith.constant 0 : i32
    %c0_i32_0 = arith.constant 0 : i32
    %c0_i32_1 = arith.constant 0 : i32
    return %arg0, %c0_i32, %c0_i32_0 : i32, i32, i32
  }
  func.func @transform_5(%arg0: i32) -> (i32, i32, i32, i32) {
    %c0_i32 = arith.constant 0 : i32
    %c0_i32_0 = arith.constant 0 : i32
    %c0_i32_1 = arith.constant 0 : i32
    %c0_i32_2 = arith.constant 0 : i32
    return %arg0, %c0_i32, %c0_i32_0, %c0_i32_1 : i32, i32, i32, i32
  }
}

</mosaic_0001>

<bundles_post_ra>
// kernel: bidirectional_lstm.1
= control target key start
LH: loop header
LB: loop body
LE: loop exit
PB: predicated region body
PF: predicated region fallthrough
CT: control target
= control target key end

     0   :  { %s4734_s0 = inlined_call_operand.hbm [shape: bf16[8,8,128], index: 0, kind: input, shape index: {}]   ;;  %s4735_s1 = inlined_call_operand.hbm [shape: bf16[2,128,512], index: 1, kind: input, shape index: {}]   ;;  %s4736_s2 = inlined_call_operand.hbm [shape: bf16[2,128,512], index: 2, kind: input, shape index: {}]   ;;  %s4737_s3 = inlined_call_operand.hbm [shape: f32[2,1,512], index: 3, kind: input, shape index: {}]   ;;  %s4738_s4 = inlined_call_operand.hbm [shape: bf16[2,128,128], index: 4, kind: input, shape index: {}]   ;;  %s4739_s5 = inlined_call_operand.hbm [shape: f32[2,8,8,128], index: 5, kind: output, shape index: {}]  }
   0x1   :  { %4755 = sst [smem:[#allocation19_spill]] %s4735_s1 }
   0x2   :  { %4756 = sst [smem:[#allocation20_spill]] %s4736_s2 }
   0x3   :  { %4757 = sst [smem:[#allocation21_spill]] %s4737_s3 }
   0x4   :  { %10 = vsyncpa [#allocation4], 0 }
   0x5   :  { %11 = vsyncpa [#allocation7], 0 }
   0x6   :  { %13 = vsyncpa [#allocation7 + $0x1], 0 }
   0x7   :  { %14 = vsyncpa [#allocation10], 0 }
   0x8   :  { %16 = vsyncpa [#allocation10 + $0x1], 0 }
   0x9   :  { %17 = vsyncpa [#allocation5], 0 }
   0xa   :  { %19 = vsyncpa [#allocation5 + $0x1], 0  ;;  %s3565_s18 = smov 0   ;;  %s3567_s19 = smov 0  }
   0xb   :  { %s3569_s20 = smov 0   ;;  %s3571_s21 = smov 0  }
   0xc LB: > { %4758 = sst [smem:[#allocation17_spill]] %s3514_s20  ;;  %s3586_s22 = sadd.s32 1, %s3518_s21   ;;  %s3518_s21 = sphi %s3571_s21, %s4799_s21   ;;  %s3514_s20 = sphi %s3569_s20, %s4796_s20   ;;  %s3510_s19 = sphi %s3567_s19, %s4798_s19   ;;  %s3506_s18 = sphi %s3565_s18, %s4797_s18  }
   0xd   : > { %s53_s23 = sadd.s32 1, %s3514_s20  ;;  %s50_s24 = ssub.s32 %s3518_s21, %s3586_s22 }
   0xe   : > { %p4740_p0 = scmp.ne.s32.totalorder %s3514_s20, %s3510_s19  ;;  %p51_p1 = scmp.eq.s32.totalorder %s50_s24, 0 }
   0xf   : > { %p61_p2 = scmp.eq.s32.totalorder %s3518_s21, 0  ;;  %p2975_p4 = scmp.lt.s32.totalorder %s3518_s21, 2 }
  0x10   : > { %s3597_s25 = scalar_select %p51_p1, %s3514_s20, %s53_s23  }
  0x11   : > { %p62_p5 = por %p61_p2, %p4740_p0  ;;  %s4741_s26 = sand.u32 1, %s3518_s21  }
  0x12   : > { %4759 = sst [smem:[#allocation18_spill]] %s3597_s25  ;;  %s3604_s27 = sand.u32 1, %s3514_s20  }
  0x13   : > { %s2546_s28 = sshll.u32 %s3604_s27, 8  ;;  %s2694_s29 = sshll.u32 %s3518_s21, 12 }
  0x14   : > { %s4760_s1 = sld [smem:[#allocation19_spill]]  ;;  %s211_s8 = scalar_lea.vmem [#allocation6], %s2546_s28 }
  0x15   : > { %s218_s9 = sshll.u32 %s211_s8, 4  ;;  %p3617_p6 = pnand %p2975_p4, %p62_p5  ;;  %s3621_s9 = int_to_ptr.vmem [resolvable:$true] %s218_s9 }
  0x16   : > { %s3625_s11 = scalar_lea.sflag [#allocation7], %s4741_s26 }
  0x17   : > { %s4761_s10 = scalar_select %p3617_p6, 1, 0 }
  0x18   : > { %p3631_p8 = pneg %p3617_p6 }
  0x1a   : > { %s3613_s7 = scalar_lea.hbm %s4760_s1, %s2694_s29  ;;  %s3301_s16 = scalar_lea.hbm %s4760_s1, 8192 }
  0x1b   : > { %s3296_s12 = scalar_lea.hbm %s3613_s7, 4096  ;;  %p3302_p11 = scmp.lt.u32.totalorder %s3613_s7, %s4760_s1 }
  0x1c   : > { %p3297_p7 = scmp.ne.s32.totalorder %s3613_s7, %s3296_s12  ;;  %p3303_p12 = scmp.lt.u32.totalorder %s3301_s16, %s3296_s12 }
  0x1d   : > { %s4762_s13 = scalar_select %p3631_p8, 1, 0 }
  0x1e   : > { %p3299_p9 = pnand %p3631_p8, %p3297_p7  ;;  %p3304_p13 = por %p3303_p12, %p3302_p11 }
  0x1f   : > { %p3305_p1 = scmp.lt.u32.totalorder %s3296_s12, %s3613_s7 }
  0x20   : > { %p3300_p10 = pneg %p3299_p9 }
  0x21   : > { %p3306_p2 = por %p3305_p1, %p3304_p13 }
  0x23   : > { %p3307_p4 = pnand %p3306_p2, %p3300_p10 }
  0x25   : > { %3310 = shalt.err (!%p3307_p4)
}
  0x26   : > { %s3311_s24 = scalar_lea.vmem %s3621_s9, 4096  ;;  %s3520_s30 = smov [#allocation6]  }
  0x27   : > { %p3312_p5 = scmp.ne.s32.totalorder %s3621_s9, %s3311_s24  ;;  %s3316_s6 = sshll.u32 %s3520_s30, 4  ;;  %s3317_s6 = int_to_ptr.vmem [resolvable:$false] %s3316_s6 }
  0x28   : > { %s3318_s8 = scalar_lea.vmem %s3317_s6, 8192  ;;  %p3319_p3 = scmp.lt.s32.totalorder %s3621_s9, %s3317_s6 }
  0x29   : > { %p3314_p7 = pnand %p3312_p5, %p3631_p8  ;;  %p3320_p0 = scmp.lt.s32.totalorder %s3318_s8, %s3311_s24 }
  0x2b   : > { %p3315_p9 = pneg %p3314_p7  ;;  %p3321_p11 = por %p3320_p0, %p3319_p3 }
  0x2d   : > { %p3322_p12 = pnand %p3321_p11, %p3315_p9 }
  0x2f   : > { %3325 = shalt.err (!%p3322_p12)
}
  0x30   : > { %s4744_s12 = smov 256   ;;  %s4745_s14 = smov 16  }
  0x31   : > { %2960 = dma.hbm_to_vmem [thread:$0]  (!%p3617_p6), %s3613_s7, 4096, %s3621_s9, %s3625_s11, %s4744_s12, %s4744_s12, %s4745_s14  }
  0x32   : > { %s4763_s2 = sld [smem:[#allocation20_spill]]  ;;  %s232_s23 = scalar_lea.vmem [#allocation8], %s2546_s28 }
  0x33   : > { %s239_s24 = sshll.u32 %s232_s23, 4  ;;  %s2552_s30 = sshll.u32 %s3604_s27, 2  ;;  %s3667_s24 = int_to_ptr.vmem [resolvable:$true] %s239_s24 }
  0x34   : > { %s2696_s6 = sshll.u32 %s3518_s21, 6  ;;  %s4764_s3 = sld [smem:[#allocation21_spill]] }
  0x35   : > { %s253_s7 = scalar_lea.vmem [#allocation9], %s2552_s30 }
  0x36   : > { %s261_s9 = sshll.u32 %s253_s7, 4  ;;  %s262_s9 = int_to_ptr.vmem [resolvable:$true] %s261_s9 }
  0x38   : > { %s3663_s17 = scalar_lea.hbm %s4763_s2, %s2694_s29  ;;  %s4765_s29 = sand.u32 1, %s3518_s21  }
  0x39   : > { %s3678_s15 = scalar_lea.sflag [#allocation10], %s4765_s29 }
  0x3a   : > { %s3674_s1 = scalar_lea.hbm %s4764_s3, %s2696_s6  ;;  %s3331_s26 = scalar_lea.hbm %s4764_s3, 128 }
  0x3b   : > { %s3326_s28 = scalar_lea.hbm %s3674_s1, 64  ;;  %p3332_p13 = scmp.lt.u32.totalorder %s3674_s1, %s4764_s3 }
  0x3c   : > { %p3327_p0 = scmp.ne.s32.totalorder %s3674_s1, %s3326_s28  ;;  %p3333_p1 = scmp.lt.u32.totalorder %s3331_s26, %s3326_s28 }
  0x3d   : > { %p3335_p4 = scmp.lt.u32.totalorder %s3326_s28, %s3674_s1 }
  0x3e   : > { %p3329_p3 = pnand %p3327_p0, %p3631_p8  ;;  %p3334_p2 = por %p3333_p1, %p3332_p13 }
  0x40   : > { %p3330_p10 = pneg %p3329_p3  ;;  %p3336_p5 = por %p3335_p4, %p3334_p2 }
  0x42   : > { %p3337_p7 = pnand %p3336_p5, %p3330_p10 }
  0x44   : > { %3340 = shalt.err (!%p3337_p7)
}
  0x45   : > { %s3341_s30 = scalar_lea.vmem %s262_s9, 64  ;;  %s3523_s7 = smov [#allocation9]  }
  0x46   : > { %p3342_p9 = scmp.ne.s32.totalorder %s262_s9, %s3341_s30  ;;  %s3346_s29 = sshll.u32 %s3523_s7, 4  ;;  %s3347_s29 = int_to_ptr.vmem [resolvable:$false] %s3346_s29 }
  0x47   : > { %s3348_s16 = scalar_lea.vmem %s3347_s29, 128  ;;  %p3349_p0 = scmp.lt.s32.totalorder %s262_s9, %s3347_s29 }
  0x48   : > { %p3344_p11 = pnand %p3342_p9, %p3631_p8  ;;  %p3350_p3 = scmp.lt.s32.totalorder %s3348_s16, %s3341_s30 }
  0x4a   : > { %p3345_p12 = pneg %p3344_p11  ;;  %p3351_p6 = por %p3350_p3, %p3349_p0 }
  0x4c   : > { %p3352_p1 = pnand %p3351_p6, %p3345_p12 }
  0x4e   : > { %3355 = shalt.err (!%p3352_p1)
}
  0x4f   : > { %p4766_p13 = scmp.ne.s32.totalorder %s4761_s10, 0  ;;  %s3699_s28 = sadd.s32 4294967295, %s3518_s21  }
  0x50   : > { %s2542_s23 = sadd.s32 4294967294, %s3518_s21   ;;  %p66_p6 = scmp.ne.s32.totalorder %s3510_s19, %s3506_s18 }
  0x51   : > { %2966 = dma.hbm_to_vmem [thread:$0]  (!%p4766_p13), %s3674_s1, 64, %s262_s9, %s3678_s15  }
  0x52   : > { %p4746_p10 = scmp.eq.s32.totalorder %s3699_s28, 0  ;;  %p168_p2 = scmp.eq.s32.totalorder %s3699_s28, 1 }
  0x53   : > { %p174_p4 = scmp.eq.s32.totalorder %s2542_s23, 1  ;;  %p2543_p5 = scmp.ge.s32.totalorder %s3518_s21, 1 }
  0x54   : > { %p3709_p7 = por %p4746_p10, %p66_p6  ;;  %p4768_p9 = scmp.ne.s32.totalorder %s3514_s20, %s3510_s19 }
  0x55   : > { %p3720_p12 = por %p174_p4, %p66_p6  ;;  %p181_p0 = scmp.lt.s32.totalorder %s3518_s21, 3 }
  0x56   : > { %s4767_s26 = scalar_select %p3709_p7, 1, 0 }
  0x57   : > { %p3716_p11 = por %p168_p2, %p4768_p9  ;;  %p3725_p3 = pnand %p2543_p5, %p181_p0 }
  0x58   : > { %s4770_s9 = scalar_select %p3720_p12, 1, 0 }
  0x59   : > { %s4769_s1 = scalar_select %p3716_p11, 1, 0 }
  0x5a   : > { %s4771_s6 = scalar_select %p3725_p3, 1, 0 }
  0x5b   : > { %s3524_s8 = smov [#allocation3]   ;;  %s3356_s7 = scalar_lea.hbm %s3663_s17, 4096 }
  0x5c   : > { %s193_s30 = sshll.u32 %s3524_s8, 4  ;;  %p3357_p2 = scmp.ne.s32.totalorder %s3663_s17, %s3356_s7  ;;  %s3729_s30 = int_to_ptr.vmem [resolvable:$true] %s193_s30 }
  0x5d   : > { %s3361_s23 = scalar_lea.hbm %s4763_s2, 8192  ;;  %p3362_p4 = scmp.lt.u32.totalorder %s3663_s17, %s4763_s2 }
  0x5e   : > { %p3359_p9 = pnand %p3357_p2, %p3631_p8  ;;  %p3363_p5 = scmp.lt.u32.totalorder %s3361_s23, %s3356_s7 }
  0x5f   : > { %p3365_p10 = scmp.lt.u32.totalorder %s3356_s7, %s3663_s17 }
  0x60   : > { %p3360_p6 = pneg %p3359_p9  ;;  %p3364_p0 = por %p3363_p5, %p3362_p4 }
  0x62   : > { %p3366_p12 = por %p3365_p10, %p3364_p0 }
  0x64   : > { %p3367_p11 = pnand %p3366_p12, %p3360_p6 }
  0x66   : > { %3370 = shalt.err (!%p3367_p11)
}
  0x67   : > { %s3371_s8 = scalar_lea.vmem %s3667_s24, 4096  ;;  %s3525_s29 = smov [#allocation8]  }
  0x68   : > { %p3372_p2 = scmp.ne.s32.totalorder %s3667_s24, %s3371_s8  ;;  %s3376_s16 = sshll.u32 %s3525_s29, 4  ;;  %s3377_s16 = int_to_ptr.vmem [resolvable:$false] %s3376_s16 }
  0x69   : > { %s3378_s12 = scalar_lea.vmem %s3377_s16, 8192  ;;  %p3379_p7 = scmp.lt.s32.totalorder %s3667_s24, %s3377_s16 }
  0x6a   : > { %p3374_p9 = pnand %p3372_p2, %p3631_p8  ;;  %p3380_p3 = scmp.lt.s32.totalorder %s3378_s12, %s3371_s8 }
  0x6c   : > { %p3375_p1 = pneg %p3374_p9  ;;  %p3381_p4 = por %p3380_p3, %p3379_p7 }
  0x6e   : > { %p3382_p5 = pnand %p3381_p4, %p3375_p1 }
  0x70   : > { %3385 = shalt.err (!%p3382_p5)
}
  0x71   : > { %s4772_s14 = smov 16   ;;  %s4773_s7 = smov 256  }
  0x72   : > { %2963 = dma.hbm_to_vmem [thread:$0]  (!%p4766_p13), %s3663_s17, 4096, %s3667_s24, %s3625_s11, %s4773_s7, %s4773_s7, %s4772_s14  }
  0x73   : > { %p4774_p10 = scmp.eq.s32.totalorder %s3699_s28, 0  ;;  %p4775_p11 = scmp.ne.s32.totalorder %s4771_s6, 0 }
  0x74   : > { %s2555_s8 = sshll.u32 %s3604_s27, 6  ;;  %s2697_s29 = sshll.u32 %s3518_s21, 10 }
  0x75   : > { %p4776_p12 = pneg %p4775_p11  ;;  %s3772_s2 = scalar_lea.hbm %s4738_s4, %s2697_s29 }
  0x76   : > { %s3386_s20 = scalar_lea.hbm %s4734_s0, 512 }
  0x77   : > { %p3763_p6 = pnand %p4776_p12, %p4774_p10  ;;  %p3387_p7 = scmp.ne.s32.totalorder %s4734_s0, %s3386_s20 }
  0x78   : > { %p3393_p2 = scmp.lt.u32.totalorder %s3386_s20, %s4734_s0 }
  0x79   : > { %p3388_p3 = pneg %p3763_p6 }
  0x7b   : > { %p3389_p1 = pnand %p3388_p3, %p3387_p7 }
  0x7d   : > { %p3390_p0 = pneg %p3389_p1 }
  0x7f   : > { %p3395_p9 = pnand %p3393_p2, %p3390_p0 }
  0x81   : > { %3398 = shalt.err (!%p3395_p9)
}
  0x82   : > { %s3399_s14 = scalar_lea.vmem %s3729_s30, 512  ;;  %p3407_p12 = scmp.lt.s32.totalorder %s3729_s30, %s3729_s30 }
  0x83   : > { %p3400_p4 = scmp.ne.s32.totalorder %s3729_s30, %s3399_s14  ;;  %p3408_p11 = scmp.lt.s32.totalorder %s3399_s14, %s3399_s14 }
  0x85   : > { %p3402_p5 = pnand %p3400_p4, %p3388_p3  ;;  %p3409_p13 = por %p3408_p11, %p3407_p12 }
  0x87   : > { %p3403_p10 = pneg %p3402_p5 }
  0x89   : > { %p3410_p8 = pnand %p3409_p13, %p3403_p10 }
  0x8b   : > { %3413 = shalt.err (!%p3410_p8)
}
  0x8c   : > { %s3526_s3 = smov 64   ;;  %s3527_s20 = smov 4  }
  0x8d   : > { %2956 = dma.hbm_to_vmem [thread:$0]  (!%p3763_p6), %s4734_s0, 512, %s3729_s30, [#allocation4], %s3526_s3, %s3526_s3, %s3527_s20  }
  0x8e   : > { %s272_s29 = scalar_lea.vmem [#allocation11], %s2555_s8  ;;  %s3414_s12 = scalar_lea.hbm %s3772_s2, 1024 }
  0x8f   : > { %s279_s16 = sshll.u32 %s272_s29, 4  ;;  %p3415_p8 = scmp.ne.s32.totalorder %s3772_s2, %s3414_s12  ;;  %s3798_s16 = int_to_ptr.vmem [resolvable:$true] %s279_s16 }
  0x90   : > { %p4778_p13 = scmp.ne.s32.totalorder %s4762_s13, 0  ;;  %s3419_s23 = scalar_lea.hbm %s4738_s4, 2048 }
  0x91   : > { %p3420_p3 = scmp.lt.u32.totalorder %s3772_s2, %s4738_s4  ;;  %p3421_p1 = scmp.lt.u32.totalorder %s3419_s23, %s3414_s12 }
  0x92   : > { %p3417_p11 = pnand %p3415_p8, %p4778_p13  ;;  %p3423_p6 = scmp.lt.u32.totalorder %s3414_s12, %s3772_s2 }
  0x93   : > { %p3422_p0 = por %p3421_p1, %p3420_p3 }
  0x94   : > { %p3418_p7 = pneg %p3417_p11 }
  0x95   : > { %p3424_p2 = por %p3423_p6, %p3422_p0 }
  0x97   : > { %p3425_p9 = pnand %p3424_p2, %p3418_p7 }
  0x99   : > { %3428 = shalt.err (!%p3425_p9)
}
  0x9a   : > { %s3429_s30 = scalar_lea.vmem %s3798_s16, 1024  ;;  %s3528_s8 = smov [#allocation11]  }
  0x9b   : > { %p3430_p4 = scmp.ne.s32.totalorder %s3798_s16, %s3429_s30  ;;  %s3434_s14 = sshll.u32 %s3528_s8, 4  ;;  %s3435_s14 = int_to_ptr.vmem [resolvable:$false] %s3434_s14 }
  0x9c   : > { %s3436_s25 = scalar_lea.vmem %s3435_s14, 2048  ;;  %p3437_p12 = scmp.lt.s32.totalorder %s3798_s16, %s3435_s14 }
  0x9d   : > { %p3432_p5 = pnand %p3430_p4, %p4778_p13  ;;  %p3438_p8 = scmp.lt.s32.totalorder %s3436_s25, %s3429_s30 }
  0x9f   : > { %p3433_p10 = pneg %p3432_p5  ;;  %p3439_p11 = por %p3438_p8, %p3437_p12 }
  0xa1   : > { %p3440_p3 = pnand %p3439_p11, %p3433_p10 }
  0xa3   : > { %3443 = shalt.err (!%p3440_p3)
}
  0xa4   : > { %p4779_p7 = scmp.ne.s32.totalorder %s4761_s10, 0  ;;  %p4780_p13 = scmp.ne.s32.totalorder %s4771_s6, 0 }
  0xa5   : > { %p4781_p1 = scmp.eq.s32.totalorder (!%p4780_p13), %s3699_s28, 0 }
  0xa6   : > { %2969 = dma.hbm_to_vmem [thread:$0]  (!%p4779_p7), %s3772_s2, 1024, %s3798_s16, %s3678_s15, %s3526_s3, %s3526_s3, %s3527_s20  }
  0xa7   : > { %291 = sbr.rel (%p4780_p13) target bundleno = 2681 (0xa79), region = 40 }
  0xae   : > { %3489 = dma.done.wait (%p4781_p1), [#allocation4], 512   ;;  %p4782_p0 = pmov %p4781_p1 }
  0xaf   : > { %s297_s10 = sand.u32 1, %s3699_s28   ;;  %s3833_s13 = sand.u32 1, %s3510_s19  }
  0xb0   : > { %3491 = vsyncadd (%p4782_p0), [#allocation4], 4294966784  ;;  %s2560_s7 = sshll.u32 %s3833_s13, 8  ;;  %s298_s29 = scalar_lea.sflag [#allocation7], %s297_s10 }
  0xb1   : > { %s3836_s12 = scalar_lea.vmem [#allocation6], %s2560_s7  ;;  %p4783_p6 = scmp.ne.s32.totalorder %s4767_s26, 0 }
  0xb3   : > { %3493 = dma.done.wait (%p4783_p6), %s298_s29, 8192  }
  0xb4   : > { %3495 = vsyncadd (%p4783_p6), %s298_s29, 4294959104  ;;  %s2562_s2 = sshll.u32 %s3833_s13, 2  ;;  %s3843_s15 = scalar_lea.vmem [#allocation8], %s2560_s7 }
  0xb5   : > { %s316_s6 = scalar_lea.sflag [#allocation10], %s297_s10  ;;  %s3845_s3 = scalar_lea.vmem [#allocation9], %s2562_s2 }
  0xb6   : > { %3497 = dma.done.wait (%p4783_p6), %s316_s6, 1088  }
  0xb7   : > { %3499 = vsyncadd (%p4783_p6), %s316_s6, 4294966208  ;;  %v3529_v0 = vmov 0   ;;  %v3020_v1 = vld [vmem:[%s3836_s12 + $0x4] ss:$16 sps:$4 sm:$0xff]   ;;  %v3022_v2 = vld [vmem:[%s3836_s12 + $0xc] ss:$16 sps:$4 sm:$0xff]   ;;  %p4784_p2 = pmov %p4782_p0  ;;  %p4785_p9 = pmov %p4782_p0 }
  0xb8   : > { %649 = vmatprep.mubr.bf16.mxu0 %v3529_v0  ;;  %722 = vmatprep.mubr.bf16.mxu1 %v3529_v0  ;;  %v3024_v3 = vld [vmem:[%s3836_s12] ss:$16 sps:$4 sm:$0xff]   ;;  %v3025_v4 = vld [vmem:[%s3836_s12 + $0x8] ss:$16 sps:$4 sm:$0xff]   ;;  %v3026_v5 = vld [vmem:[%s3836_s12 + $0x24] ss:$16 sps:$4 sm:$0xff]   ;;  %p4786_p4 = pmov %p4782_p0  ;;  %p4787_p5 = pmov %p4782_p0 }
  0xb9   : > { %617 = vmatprep.subr.bf16.mxu0 %v3020_v1  ;;  %690 = vmatprep.subr.bf16.mxu1 %v3022_v2  ;;  %v3028_v6 = vld [vmem:[%s3836_s12 + $0x2c] ss:$16 sps:$4 sm:$0xff]   ;;  %v3030_v7 = vld [vmem:[%s3836_s12 + $0x20] ss:$16 sps:$4 sm:$0xff]   ;;  %v3031_v8 = vld [vmem:[%s3836_s12 + $0x28] ss:$16 sps:$4 sm:$0xff]   ;;  %p4788_p10 = pmov %p4782_p0  ;;  %p4789_p12 = pmov %p4782_p0 }
  0xba   : > { %618 = vmatpush1.bf16.msra.mxu0 %v3024_v3  ;;  %691 = vmatpush1.bf16.msra.mxu1 %v3025_v4  ;;  %v3032_v9 = vld [vmem:[%s3836_s12 + $0x44] ss:$16 sps:$4 sm:$0xff]   ;;  %v3034_v10 = vld [vmem:[%s3836_s12 + $0x4c] ss:$16 sps:$4 sm:$0xff]   ;;  %v3036_v11 = vld [vmem:[%s3836_s12 + $0x40] ss:$16 sps:$4 sm:$0xff]   ;;  %p4790_p8 = pmov %p4782_p0  ;;  %p4791_p11 = pmov %p4782_p0 }
  0xbb   : > { %619 = vmatprep.subr.bf16.mxu0 %v3026_v5  ;;  %692 = vmatprep.subr.bf16.mxu1 %v3028_v6  ;;  %v3037_v12 = vld [vmem:[%s3836_s12 + $0x48] ss:$16 sps:$4 sm:$0xff]   ;;  %v3038_v13 = vld [vmem:[%s3836_s12 + $0x64] ss:$16 sps:$4 sm:$0xff]   ;;  %v3040_v14 = vld [vmem:[%s3836_s12 + $0x6c] ss:$16 sps:$4 sm:$0xff]  }
  0xbc   : > { %v3042_v15 = vld [vmem:[%s3836_s12 + $0x60] ss:$16 sps:$4 sm:$0xff]   ;;  %v3043_v16 = vld [vmem:[%s3836_s12 + $0x68] ss:$16 sps:$4 sm:$0xff]   ;;  %v3044_v17 = vld [vmem:[%s3836_s12 + $0x84] ss:$16 sps:$4 sm:$0xff]  }
  0xbd   : > { %v3046_v18 = vld [vmem:[%s3836_s12 + $0x8c] ss:$16 sps:$4 sm:$0xff]   ;;  %v3048_v19 = vld [vmem:[%s3836_s12 + $0x80] ss:$16 sps:$4 sm:$0xff]   ;;  %v3049_v20 = vld [vmem:[%s3836_s12 + $0x88] ss:$16 sps:$4 sm:$0xff]  }
  0xbe   : > { %620 = vmatpush1.bf16.msra.mxu0 %v3030_v7  ;;  %693 = vmatpush1.bf16.msra.mxu1 %v3031_v8  ;;  %v3050_v21 = vld [vmem:[%s3836_s12 + $0xa4] ss:$16 sps:$4 sm:$0xff]   ;;  %v3052_v22 = vld [vmem:[%s3836_s12 + $0xac] ss:$16 sps:$4 sm:$0xff]   ;;  %v3054_v23 = vld [vmem:[%s3836_s12 + $0xa0] ss:$16 sps:$4 sm:$0xff]  }
  0xbf   : > { %621 = vmatprep.subr.bf16.mxu0 %v3032_v9  ;;  %694 = vmatprep.subr.bf16.mxu1 %v3034_v10  ;;  %v3055_v24 = vld [vmem:[%s3836_s12 + $0xa8] ss:$16 sps:$4 sm:$0xff]   ;;  %v3056_v25 = vld [vmem:[%s3836_s12 + $0xc4] ss:$16 sps:$4 sm:$0xff]   ;;  %v3058_v26 = vld [vmem:[%s3836_s12 + $0xcc] ss:$16 sps:$4 sm:$0xff]  }
  0xc0   : > { %v3060_v27 = vld [vmem:[%s3836_s12 + $0xc0] ss:$16 sps:$4 sm:$0xff]   ;;  %v3061_v28 = vld [vmem:[%s3836_s12 + $0xc8] ss:$16 sps:$4 sm:$0xff]   ;;  %v3062_v29 = vld [vmem:[%s3836_s12 + $0xe4] ss:$16 sps:$4 sm:$0xff]  }
  0xc1   : > { %v3064_v30 = vld [vmem:[%s3836_s12 + $0xec] ss:$16 sps:$4 sm:$0xff]   ;;  %v3066_v31 = vld [vmem:[%s3836_s12 + $0xe0] ss:$16 sps:$4 sm:$0xff]   ;;  %v3067_v32 = vld [vmem:[%s3836_s12 + $0xe8] ss:$16 sps:$4 sm:$0xff]  }
  0xc2   : > { %622 = vmatpush1.bf16.msra.mxu0 %v3036_v11  ;;  %695 = vmatpush1.bf16.msra.mxu1 %v3037_v12  ;;  %v3886_v33 = vld [vmem:[%s3843_s15 + $0x4] ss:$16 sps:$4 sm:$0xff]   ;;  %v3889_v34 = vld [vmem:[%s3843_s15 + $0xc] ss:$16 sps:$4 sm:$0xff]   ;;  %v3892_v36 = vld [vmem:[%s3843_s15] ss:$16 sps:$4 sm:$0xff]  }
  0xc3   : > { %623 = vmatprep.subr.bf16.mxu0 %v3038_v13  ;;  %696 = vmatprep.subr.bf16.mxu1 %v3040_v14  ;;  %v3068_v35 = vld [vmem:[#allocation3] sm:$0xff]   ;;  %v3895_v37 = vld [vmem:[%s3843_s15 + $0x8] ss:$16 sps:$4 sm:$0xff]   ;;  %v3903_v39 = vld [vmem:[%s3843_s15 + $0x2c] ss:$16 sps:$4 sm:$0xff]   ;;  %s2563_s26 = sshll.u32 %s3833_s13, 6 }
  0xc4   : > { %v3900_v38 = vld [vmem:[%s3843_s15 + $0x24] ss:$16 sps:$4 sm:$0xff]   ;;  %v3906_v40 = vld [vmem:[%s3843_s15 + $0x20] ss:$16 sps:$4 sm:$0xff]   ;;  %v3914_v42 = vld [vmem:[%s3843_s15 + $0x28] ss:$16 sps:$4 sm:$0xff]  }
  0xc5   : > { %v3909_v41 = vld [vmem:[%s3843_s15 + $0x44] ss:$16 sps:$4 sm:$0xff]   ;;  %v3919_v43 = vld [vmem:[%s3843_s15 + $0x4c] ss:$16 sps:$4 sm:$0xff]   ;;  %v3924_v45 = vld [vmem:[%s3843_s15 + $0x40] ss:$16 sps:$4 sm:$0xff]  }
  0xc6   : > { %624 = vmatpush1.bf16.msra.mxu0 %v3042_v15  ;;  %697 = vmatpush1.bf16.msra.mxu1 %v3043_v16  ;;  %v3078_v44 = vld [vmem:[#allocation3 + $0x8] sm:$0xff]   ;;  %v3934_v47 = vld [vmem:[%s3843_s15 + $0x64] ss:$16 sps:$4 sm:$0xff]   ;;  %v3940_v49 = vld [vmem:[%s3843_s15 + $0x60] ss:$16 sps:$4 sm:$0xff]   ;;  %s4043_s20 = scalar_lea.vmem [#allocation11], %s2563_s26  ;;  %v413_v15 = vlaneseq }
  0xc7   : > { %625 = vmatprep.subr.bf16.mxu0 %v3044_v17  ;;  %698 = vmatprep.subr.bf16.mxu1 %v3046_v18  ;;  %v3929_v46 = vld [vmem:[%s3843_s15 + $0x48] ss:$16 sps:$4 sm:$0xff]   ;;  %v3937_v48 = vld [vmem:[%s3843_s15 + $0x6c] ss:$16 sps:$4 sm:$0xff]   ;;  %v3945_v50 = vld [vmem:[%s3843_s15 + $0x84] ss:$16 sps:$4 sm:$0xff]  }
  0xc8   : > { %v3948_v51 = vld [vmem:[%s3843_s15 + $0x68] ss:$16 sps:$4 sm:$0xff]   ;;  %v3953_v52 = vld [vmem:[%s3843_s15 + $0x8c] ss:$16 sps:$4 sm:$0xff]   ;;  %v3091_v53 = vld [vmem:[#allocation3 + $0x10] sm:$0xff]   ;;  %v3530_v7 = vmov 0.0  }
  0xc9   : > { %v3960_v54 = vld [vmem:[%s3843_s15 + $0x80] ss:$16 sps:$4 sm:$0xff]   ;;  %v3963_v55 = vld [vmem:[%s3843_s15 + $0x88] ss:$16 sps:$4 sm:$0xff]   ;;  %v3968_v56 = vld [vmem:[%s3843_s15 + $0xa4] ss:$16 sps:$4 sm:$0xff]  }
  0xca   : > { %626 = vmatpush1.bf16.msra.mxu0 %v3048_v19  ;;  %699 = vmatpush1.bf16.msra.mxu1 %v3049_v20  ;;  %v3971_v57 = vld [vmem:[%s3843_s15 + $0xac] ss:$16 sps:$4 sm:$0xff]   ;;  %v3976_v58 = vld [vmem:[%s3843_s15 + $0xa0] ss:$16 sps:$4 sm:$0xff]   ;;  %v3979_v59 = vld [vmem:[%s3843_s15 + $0xa8] ss:$16 sps:$4 sm:$0xff]  }
  0xcb   : > { %627 = vmatprep.subr.bf16.mxu0 %v3050_v21  ;;  %700 = vmatprep.subr.bf16.mxu1 %v3052_v22  ;;  %v3984_v60 = vld [vmem:[%s3843_s15 + $0xc4] ss:$16 sps:$4 sm:$0xff]   ;;  %v3987_v61 = vld [vmem:[%s3843_s15 + $0xcc] ss:$16 sps:$4 sm:$0xff]   ;;  %v3994_v63 = vld [vmem:[%s3843_s15 + $0xc0] ss:$16 sps:$4 sm:$0xff]  }
  0xcc   : > { %v3104_v62 = vld [vmem:[#allocation3 + $0x18] sm:$0xff]   ;;  %v4002_v2 = vld [vmem:[%s3843_s15 + $0xe4] ss:$16 sps:$4 sm:$0xff]   ;;  %v4010_v4 = vld [vmem:[%s3843_s15 + $0xe0] ss:$16 sps:$4 sm:$0xff]   ;;  %vm3531_vm0 = vmmov 0  }
  0xcd   : > { %v3997_v1 = vld [vmem:[%s3843_s15 + $0xc8] ss:$16 sps:$4 sm:$0xff]   ;;  %v4005_v3 = vld [vmem:[%s3843_s15 + $0xec] ss:$16 sps:$4 sm:$0xff]   ;;  %v4053_v8 = vld [vmem:[%s4043_s20 + $0x8] sm:$0xff]   ;;  %v414_v16 = vshrl.u32 %v413_v15, 7 }
  0xce   : > { %628 = vmatpush1.bf16.msra.mxu0 %v3054_v23  ;;  %701 = vmatpush1.bf16.msra.mxu1 %v3055_v24  ;;  %v4013_v5 = vld [vmem:[%s3843_s15 + $0xe8] ss:$16 sps:$4 sm:$0xff]   ;;  %v4063_v10 = vld [vmem:[%s4043_s20 + $0x18] sm:$0xff]   ;;  %v4072_v12 = vld [vmem:[%s4043_s20 + $0x28] sm:$0xff]   ;;  %s4128_s16 = scalar_select %p4784_p2, 0, 7 }
  0xcf   : > { %629 = vmatprep.subr.bf16.mxu0 %v3056_v25  ;;  %702 = vmatprep.subr.bf16.mxu1 %v3058_v26  ;;  %v4046_v6 = vld [vmem:[%s4043_s20] sm:$0xff]   ;;  %v4058_v9 = vld [vmem:[%s4043_s20 + $0x10] sm:$0xff]   ;;  %v4084_v14 = vld [vmem:[%s4043_s20 + $0x38] sm:$0xff]   ;;  %v415_v17 = vsub.s32 0, %v414_v16  ;;  %v423_v18 = vsub.s32 2, %v414_v16  ;;  %v419_v20 = vsub.s32 1, %v414_v16 }
  0xd0   : > { %v4068_v11 = vld [vmem:[%s4043_s20 + $0x20] sm:$0xff]   ;;  %v4079_v13 = vld [vmem:[%s4043_s20 + $0x30] sm:$0xff]   ;;  %v411_v19 = vld [vmem:[%s3845_s3] sm:$0xf]  ;;  %v427_v21 = vsub.s32 3, %v414_v16  ;;  %s2698_s11 = sshll.u32 %s4128_s16, 5 }
  0xd1   : > { %v4090_v22 = vrot.slane %v411_v19, %v415_v17  ;;  %v4092_v23 = vrot.slane %v411_v19, %v423_v18  ;;  %v4094_v24 = vrot.slane %v411_v19, %v419_v20  ;;  %s847_s17 = scalar_lea.vmem [#allocation2], %s2698_s11  ;;  %s2646_s23 = sshll.u32 %s4128_s16, 3 }
  0xd2   : > { %630 = vmatpush1.bf16.msra.mxu0 %v3060_v27  ;;  %703 = vmatpush1.bf16.msra.mxu1 %v3061_v28  ;;  %v4096_v25 = vrot.slane %v411_v19, %v427_v21  ;;  %s4193_s24 = scalar_select %p4785_p9, 1, 6 }
  0xd3   : > { %631 = vmatprep.subr.bf16.mxu0 %v3062_v29  ;;  %704 = vmatprep.subr.bf16.mxu1 %v3064_v30  ;;  %s4197_s27 = scalar_lea.vmem [#allocation12], %s2563_s26  ;;  %p4792_p7 = scmp.ne.s32.totalorder %s4769_s1, 0 }
  0xd4   : > { %s1212_s30 = scalar_lea.vmem %s4197_s27, %s2646_s23 [#allocation12]  ;;  %s2699_s8 = sshll.u32 %s4193_s24, 5 }
  0xd5   : > { %s1217_s14 = scalar_lea.vmem [#allocation2], %s2699_s8  ;;  %s2652_s25 = sshll.u32 %s4193_s24, 3 }
  0xd6   : > { %632 = vmatpush1.bf16.msra.mxu0 %v3066_v31  ;;  %705 = vmatpush1.bf16.msra.mxu1 %v3067_v32  ;;  %s4260_s10 = scalar_select %p4786_p4, 2, 5 }
  0xd7   : > { %1012 = vmatprep.subr.bf16.mxu0 %v3886_v33  ;;  %1053 = vmatprep.subr.bf16.mxu1 %v3889_v34  ;;  %s1374_s7 = scalar_lea.vmem %s4197_s27, %s2652_s25 [#allocation12] }
  0xd8   : > { %s2700_s29 = sshll.u32 %s4260_s10, 5  ;;  %s2658_s2 = sshll.u32 %s4260_s10, 3 }
  0xd9   : > { %650 = vmatmul.mubr.bf16.vlgmr.msra.gmra.mrb[0].mxu0 %v3068_v35  ;;  %723 = vmatmul.mubr.bf16.vlgmr.msra.gmra.mrb[0].mxu1 %v3068_v35  ;;  %s1379_s12 = scalar_lea.vmem [#allocation2], %s2700_s29  ;;  %s1536_s3 = scalar_lea.vmem %s4197_s27, %s2658_s2 [#allocation12] }
  0xda   : > { %1013 = vmatpush1.bf16.msra.mxu0 %v3892_v36  ;;  %1054 = vmatpush1.bf16.msra.mxu1 %v3895_v37  ;;  %s4374_s6 = scalar_select %p4787_p5, 3, 4 }
  0xdb   : > { %1014 = vmatprep.subr.bf16.mxu0 %v3900_v38  ;;  %659 = vmatprep.mubr.bf16.mxu0 %v3529_v0 }
  0xdc   : > { %732 = vmatprep.mubr.bf16.mxu1 %v3529_v0  ;;  %1055 = vmatprep.subr.bf16.mxu1 %v3903_v39  ;;  %s2701_s26 = sshll.u32 %s4374_s6, 5  ;;  %s2664_s11 = sshll.u32 %s4374_s6, 3 }
  0xdd   : > { %s1541_s16 = scalar_lea.vmem [#allocation2], %s2701_s26  ;;  %s1698_s23 = scalar_lea.vmem %s4197_s27, %s2664_s11 [#allocation12] }
  0xde   : > { %1015 = vmatpush1.bf16.msra.mxu0 %v3906_v40  ;;  %1056 = vmatpush1.bf16.msra.mxu1 %v3914_v42 }
  0xdf   : > { %1016 = vmatprep.subr.bf16.mxu0 %v3909_v41  ;;  %1057 = vmatprep.subr.bf16.mxu1 %v3919_v43 }
  0xe1   : > { %660 = vmatmul.mubr.bf16.gmra.mrb[4].mxu0 %v3078_v44  ;;  %733 = vmatmul.mubr.bf16.gmra.mrb[4].mxu1 %v3078_v44 }
  0xe2   : > { %1017 = vmatpush1.bf16.msra.mxu0 %v3924_v45  ;;  %1058 = vmatpush1.bf16.msra.mxu1 %v3929_v46 }
  0xe3   : > { %1018 = vmatprep.subr.bf16.mxu0 %v3934_v47  ;;  %669 = vmatprep.mubr.bf16.mxu0 %v3529_v0 }
  0xe4   : > { %742 = vmatprep.mubr.bf16.mxu1 %v3529_v0  ;;  %1059 = vmatprep.subr.bf16.mxu1 %v3937_v48 }
  0xe6   : > { %1019 = vmatpush1.bf16.msra.mxu0 %v3940_v49  ;;  %1060 = vmatpush1.bf16.msra.mxu1 %v3948_v51 }
  0xe7   : > { %1020 = vmatprep.subr.bf16.mxu0 %v3945_v50  ;;  %1061 = vmatprep.subr.bf16.mxu1 %v3953_v52 }
  0xe9   : > { %670 = vmatmul.mubr.bf16.gmra.mrb[8].mxu0 %v3091_v53  ;;  %743 = vmatmul.mubr.bf16.gmra.mrb[8].mxu1 %v3091_v53 }
  0xea   : > { %1021 = vmatpush1.bf16.msra.mxu0 %v3960_v54  ;;  %1062 = vmatpush1.bf16.msra.mxu1 %v3963_v55 }
  0xeb   : > { %1022 = vmatprep.subr.bf16.mxu0 %v3968_v56  ;;  %679 = vmatprep.mubr.bf16.mxu0 %v3529_v0 }
  0xec   : > { %752 = vmatprep.mubr.bf16.mxu1 %v3529_v0  ;;  %1063 = vmatprep.subr.bf16.mxu1 %v3971_v57 }
  0xee   : > { %1023 = vmatpush1.bf16.msra.mxu0 %v3976_v58  ;;  %1064 = vmatpush1.bf16.msra.mxu1 %v3979_v59 }
  0xef   : > { %1024 = vmatprep.subr.bf16.mxu0 %v3984_v60  ;;  %1065 = vmatprep.subr.bf16.mxu1 %v3987_v61 }
  0xf1   : > { %680 = vmatmul.mubr.bf16.gmra.mrb[12].mxu0 %v3104_v62  ;;  %753 = vmatmul.mubr.bf16.gmra.mrb[12].mxu1 %v3104_v62 }
  0xf2   : > { %1025 = vmatpush1.bf16.msra.mxu0 %v3994_v63  ;;  %1066 = vmatpush1.bf16.msra.mxu1 %v3997_v1 }
  0xf3   : > { %1026 = vmatprep.subr.bf16.mxu0 %v4002_v2  ;;  %1044 = vmatprep.mubr.bf16.mxu0 %v3529_v0 }
  0xf4   : > { %1067 = vmatprep.subr.bf16.mxu1 %v4005_v3  ;;  %1085 = vmatprep.mubr.bf16.mxu1 %v3529_v0 }
  0xf6   : > { %1027 = vmatpush1.bf16.msra.mxu0 %v4010_v4  ;;  %1068 = vmatpush1.bf16.msra.mxu1 %v4013_v5 }
  0xf7   : > { %1222 = vmatprep.subr.bf16.mxu1 %v3886_v33  ;;  %2779 = vmatprep.subr.bf16.mxu0 %v3530_v7 }
  0xf9   : > { %1045 = vmatmul.mubr.bf16.vlgmr.msra.gmra.mrb[16].mxu0 %v3529_v0  ;;  %1086 = vmatmul.mubr.bf16.vlgmr.msra.gmra.mrb[16].mxu1 %v3529_v0 }
  0xfa   : > { %1223 = vmatpush1.bf16.msra.mxu1 %v3892_v36  ;;  %1254 = vmatprep.mubr.bf16.mxu1 %v3529_v0 }
  0xfb   : > { %1224 = vmatprep.subr.bf16.mxu1 %v3900_v38  ;;  %2780 = vmatpush3.bf16.msra.mxu0 %v4046_v6 }
  0xfc   : > { %2781 = vmatprep.subr.bf16.mxu0 %v3530_v7  ;;  %2795 = vmatprep.mubr.msk.bf16.mxu0 %vm3531_vm0, %v3530_v7 }
  0xfe   : > { %1225 = vmatpush1.bf16.msra.mxu1 %v3906_v40 }
  0xff   : > { %1226 = vmatprep.subr.bf16.mxu1 %v3909_v41  ;;  %2782 = vmatpush3.bf16.msra.mxu0 %v4053_v8 }
 0x100   : > { %2783 = vmatprep.subr.bf16.mxu0 %v3530_v7 }
 0x102   : > { %1227 = vmatpush1.bf16.msra.mxu1 %v3924_v45 }
 0x103   : > { %1228 = vmatprep.subr.bf16.mxu1 %v3934_v47  ;;  %2784 = vmatpush3.bf16.msra.mxu0 %v4058_v9 }
 0x104   : > { %2785 = vmatprep.subr.bf16.mxu0 %v3530_v7 }
 0x106   : > { %1229 = vmatpush1.bf16.msra.mxu1 %v3940_v49 }
 0x107   : > { %1230 = vmatprep.subr.bf16.mxu1 %v3945_v50  ;;  %2786 = vmatpush3.bf16.msra.mxu0 %v4063_v10 }
 0x108   : > { %2787 = vmatprep.subr.bf16.mxu0 %v3530_v7 }
 0x10a   : > { %1231 = vmatpush1.bf16.msra.mxu1 %v3960_v54 }
 0x10b   : > { %1232 = vmatprep.subr.bf16.mxu1 %v3968_v56  ;;  %2788 = vmatpush3.bf16.msra.mxu0 %v4068_v11 }
 0x10c   : > { %2789 = vmatprep.subr.bf16.mxu0 %v3530_v7 }
 0x10e   : > { %1233 = vmatpush1.bf16.msra.mxu1 %v3976_v58 }
 0x10f   : > { %1234 = vmatprep.subr.bf16.mxu1 %v3984_v60  ;;  %2790 = vmatpush3.bf16.msra.mxu0 %v4072_v12 }
 0x110   : > { %2791 = vmatprep.subr.bf16.mxu0 %v3530_v7 }
 0x112   : > { %1235 = vmatpush1.bf16.msra.mxu1 %v3994_v63 }
 0x113   : > { %1236 = vmatprep.subr.bf16.mxu1 %v4002_v2  ;;  %2792 = vmatpush3.bf16.msra.mxu0 %v4079_v13 }
 0x114   : > { %2793 = vmatprep.subr.bf16.mxu0 %v3530_v7 }
 0x116   : > { %1237 = vmatpush1.bf16.msra.mxu1 %v4010_v4 }
 0x117   : > { %2799 = vmatprep.subr.bf16.mxu1 %v3530_v7  ;;  %2794 = vmatpush3.bf16.msra.mxu0 %v4084_v14 }
 0x118   : > { %1263 = vmatprep.subr.bf16.mxu0 %v3889_v34 }
 0x1ac   : > { %v651_v26 = vpop.f32.mrb[0].mxu0  ;;  %v724_v27 = vpop.f32.mrb[0].mxu1 }
 0x1ad   : > { %v652_v28 = vadd.f32 %v651_v26, %v4090_v22  ;;  %v653_v29 = vpop.f32.mrb[1].mxu0  ;;  %v725_v30 = vadd.f32 %v724_v27, %v4092_v23  ;;  %v726_v31 = vpop.f32.mrb[1].mxu1 }
 0x1ae   : > { %v654_v32 = vadd.f32 %v653_v29, %v4094_v24  ;;  %v655_v35 = vpop.f32.mrb[2].mxu0  ;;  %v727_v44 = vadd.f32 %v726_v31, %v4096_v25  ;;  %v728_v53 = vpop.f32.mrb[2].mxu1 }
 0x1af   : > { %763 = vst [vmem:[#allocation2] sm:$0xff] %v652_v28  ;;  %v656_v62 = vadd.f32 %v655_v35, %v4090_v22  ;;  %v657_v15 = vpop.f32.mrb[3].mxu0  ;;  %765 = vst [vmem:[#allocation2 + $0x10] sm:$0xff] %v725_v30  ;;  %v729_v16 = vadd.f32 %v728_v53, %v4092_v23  ;;  %v730_v17 = vpop.f32.mrb[3].mxu1 }
 0x1b0   : > { %764 = vst [vmem:[#allocation2 + $0x8] sm:$0xff] %v654_v32  ;;  %v658_v18 = vadd.f32 %v657_v15, %v4094_v24  ;;  %766 = vst [vmem:[#allocation2 + $0x18] sm:$0xff] %v727_v44  ;;  %v731_v19 = vadd.f32 %v730_v17, %v4096_v25 }
 0x1b1   : > { %767 = vst [vmem:[#allocation2 + $0x20] sm:$0xff] %v656_v62  ;;  %769 = vst [vmem:[#allocation2 + $0x30] sm:$0xff] %v729_v16 }
 0x1b2   : > { %768 = vst [vmem:[#allocation2 + $0x28] sm:$0xff] %v658_v18  ;;  %770 = vst [vmem:[#allocation2 + $0x38] sm:$0xff] %v731_v19 }
 0x1b4   : > { %v661_v20 = vpop.f32.mrb[4].mxu0  ;;  %v734_v21 = vpop.f32.mrb[4].mxu1 }
 0x1b5   : > { %v662_v26 = vadd.f32 %v661_v20, %v4090_v22  ;;  %v663_v27 = vpop.f32.mrb[5].mxu0  ;;  %v735_v28 = vadd.f32 %v734_v21, %v4092_v23  ;;  %v736_v29 = vpop.f32.mrb[5].mxu1 }
 0x1b6   : > { %v664_v30 = vadd.f32 %v663_v27, %v4094_v24  ;;  %v665_v31 = vpop.f32.mrb[6].mxu0  ;;  %v737_v32 = vadd.f32 %v736_v29, %v4096_v25  ;;  %v738_v35 = vpop.f32.mrb[6].mxu1 }
 0x1b7   : > { %771 = vst [vmem:[#allocation2 + $0x40] sm:$0xff] %v662_v26  ;;  %v666_v44 = vadd.f32 %v665_v31, %v4090_v22  ;;  %v667_v53 = vpop.f32.mrb[7].mxu0  ;;  %773 = vst [vmem:[#allocation2 + $0x50] sm:$0xff] %v735_v28  ;;  %v739_v62 = vadd.f32 %v738_v35, %v4092_v23  ;;  %v740_v15 = vpop.f32.mrb[7].mxu1 }
 0x1b8   : > { %772 = vst [vmem:[#allocation2 + $0x48] sm:$0xff] %v664_v30  ;;  %v668_v16 = vadd.f32 %v667_v53, %v4094_v24  ;;  %774 = vst [vmem:[#allocation2 + $0x58] sm:$0xff] %v737_v32  ;;  %v741_v17 = vadd.f32 %v740_v15, %v4096_v25 }
 0x1b9   : > { %775 = vst [vmem:[#allocation2 + $0x60] sm:$0xff] %v666_v44  ;;  %777 = vst [vmem:[#allocation2 + $0x70] sm:$0xff] %v739_v62 }
 0x1ba   : > { %776 = vst [vmem:[#allocation2 + $0x68] sm:$0xff] %v668_v16  ;;  %778 = vst [vmem:[#allocation2 + $0x78] sm:$0xff] %v741_v17 }
 0x1bc   : > { %v671_v18 = vpop.f32.mrb[8].mxu0  ;;  %v744_v19 = vpop.f32.mrb[8].mxu1 }
 0x1bd   : > { %v672_v20 = vadd.f32 %v671_v18, %v4090_v22  ;;  %v673_v21 = vpop.f32.mrb[9].mxu0  ;;  %v745_v26 = vadd.f32 %v744_v19, %v4092_v23  ;;  %v746_v27 = vpop.f32.mrb[9].mxu1 }
 0x1be   : > { %v674_v28 = vadd.f32 %v673_v21, %v4094_v24  ;;  %v675_v29 = vpop.f32.mrb[10].mxu0  ;;  %v747_v30 = vadd.f32 %v746_v27, %v4096_v25  ;;  %v748_v31 = vpop.f32.mrb[10].mxu1 }
 0x1bf   : > { %779 = vst [vmem:[#allocation2 + $0x80] sm:$0xff] %v672_v20  ;;  %v676_v32 = vadd.f32 %v675_v29, %v4090_v22  ;;  %v677_v35 = vpop.f32.mrb[11].mxu0  ;;  %781 = vst [vmem:[#allocation2 + $0x90] sm:$0xff] %v745_v26  ;;  %v749_v44 = vadd.f32 %v748_v31, %v4092_v23  ;;  %v750_v53 = vpop.f32.mrb[11].mxu1 }
 0x1c0   : > { %780 = vst [vmem:[#allocation2 + $0x88] sm:$0xff] %v674_v28  ;;  %v678_v62 = vadd.f32 %v677_v35, %v4094_v24  ;;  %782 = vst [vmem:[#allocation2 + $0x98] sm:$0xff] %v747_v30  ;;  %v751_v15 = vadd.f32 %v750_v53, %v4096_v25 }
 0x1c1   : > { %783 = vst [vmem:[#allocation2 + $0xa0] sm:$0xff] %v676_v32  ;;  %785 = vst [vmem:[#allocation2 + $0xb0] sm:$0xff] %v749_v44 }
 0x1c2   : > { %784 = vst [vmem:[#allocation2 + $0xa8] sm:$0xff] %v678_v62  ;;  %786 = vst [vmem:[#allocation2 + $0xb8] sm:$0xff] %v751_v15 }
 0x1c4   : > { %v681_v16 = vpop.f32.mrb[12].mxu0  ;;  %v754_v17 = vpop.f32.mrb[12].mxu1 }
 0x1c5   : > { %v682_v18 = vadd.f32 %v681_v16, %v4090_v22  ;;  %v755_v19 = vadd.f32 %v754_v17, %v4092_v23  ;;  %v683_v20 = vpop.f32.mrb[13].mxu0  ;;  %v756_v21 = vpop.f32.mrb[13].mxu1 }
 0x1c6   : > { %v684_v26 = vadd.f32 %v683_v20, %v4094_v24  ;;  %v757_v27 = vadd.f32 %v756_v21, %v4096_v25  ;;  %v685_v28 = vpop.f32.mrb[14].mxu0  ;;  %v758_v29 = vpop.f32.mrb[14].mxu1 }
 0x1c7   : > { %787 = vst [vmem:[#allocation2 + $0xc0] sm:$0xff] %v682_v18  ;;  %789 = vst [vmem:[#allocation2 + $0xd0] sm:$0xff] %v755_v19  ;;  %v686_v30 = vadd.f32 %v685_v28, %v4090_v22  ;;  %v759_v31 = vadd.f32 %v758_v29, %v4092_v23  ;;  %v687_v32 = vpop.f32.mrb[15].mxu0  ;;  %v760_v35 = vpop.f32.mrb[15].mxu1 }
 0x1c8   : > { %788 = vst [vmem:[#allocation2 + $0xc8] sm:$0xff] %v684_v26  ;;  %790 = vst [vmem:[#allocation2 + $0xd8] sm:$0xff] %v757_v27  ;;  %v688_v44 = vadd.f32 %v687_v32, %v4094_v24  ;;  %v761_v53 = vadd.f32 %v760_v35, %v4096_v25 }
 0x1c9   : > { %791 = vst [vmem:[#allocation2 + $0xe0] sm:$0xff] %v686_v30  ;;  %793 = vst [vmem:[#allocation2 + $0xf0] sm:$0xff] %v759_v31 }
 0x1ca   : > { %792 = vst [vmem:[#allocation2 + $0xe8] sm:$0xff] %v688_v44  ;;  %794 = vst [vmem:[#allocation2 + $0xf8] sm:$0xff] %v761_v53 }
 0x1cc   : > { %v1046_v62 = vpop.f32.mrb[16].mxu0  ;;  %v1087_v15 = vpop.f32.mrb[16].mxu1 }
 0x1cd   : > { %v1048_v16 = vpop.f32.mrb[17].mxu0  ;;  %v1089_v17 = vpop.f32.mrb[17].mxu1 }
 0x1ce   : > { %v1050_v22 = vpop.f32.mrb[18].mxu0  ;;  %v1091_v18 = vpop.f32.mrb[18].mxu1 }
 0x1cf   : > { %v1051_v23 = vpop.f32.mrb[19].mxu0  ;;  %v1092_v19 = vpop.f32.mrb[19].mxu1 }
 0x1d1   : > { %v848_v20 = vld [vmem:[%s847_s17] sm:$0xff]  ;;  %v849_v26 = vld [vmem:[%s847_s17 + $0x8] sm:$0xff]  ;;  %v851_v28 = vld [vmem:[%s847_s17 + $0x18] sm:$0xff] }
 0x1d2   : > { %v1094_v21 = vadd.f32 %v1046_v62, %v848_v20  ;;  %v1095_v24 = vadd.f32 %v1048_v16, %v849_v26  ;;  %v1097_v29 = vadd.f32 %v1089_v17, %v851_v28  ;;  %v850_v30 = vld [vmem:[%s847_s17 + $0x10] sm:$0xff]  ;;  %s4497_s17 = scalar_select %p4788_p10, 4, 3 }
 0x1d3   : > { %v1096_v32 = vadd.f32 %v1087_v15, %v850_v30 }
 0x1d4   : > { %v2635_v27 = vmul.f32 -1.442695, %v1094_v21  ;;  %v2636_v25 = vmul.f32 -1.442695, %v1095_v24  ;;  %v2637_v31 = vmul.f32 -1.442695, %v1097_v29 }
 0x1d5   : > { %s2702_s24 = sshll.u32 %s4497_s17, 5 }
 0x1d6   : > { %3128 = vpow2.f32 %v2635_v27 }
 0x1d7   : > { %3130 = vpow2.f32 %v2636_v25 }
 0x1d8   : > { %3132 = vpow2.f32 %v2637_v31 }
 0x1d9   : > { %3134 = vtanh.f32 %v1096_v32 }
 0x1e0   : > { %v3129_v35 = vpop.eup %3128 }
 0x1e1   : > { %v3131_v44 = vpop.eup %3130  ;;  %v1101_v53 = vadd.f32 1.0, %v3129_v35 }
 0x1e2   : > { %v1107_v22 = vadd.f32 1.0, %v3131_v44  ;;  %v3133_v62 = vpop.eup %3132 }
 0x1e3   : > { %3136 = vrcp.f32 %v1101_v53  ;;  %v3135_v18 = vpop.eup %3134  ;;  %v1114_v20 = vadd.f32 1.0, %v3133_v62  ;;  %v1219_v53 = vld [vmem:[%s1217_s14 + $0x8] sm:$0xff] }
 0x1e4   : > { %3138 = vrcp.f32 %v1107_v22  ;;  %v1218_v22 = vld [vmem:[%s1217_s14] sm:$0xff] }
 0x1e5   : > { %3140 = vrcp.f32 %v1114_v20 }
 0x1ed   : > { %v3137_v16 = vpop.eup %3136 }
 0x1ee   : > { %v3139_v23 = vpop.eup %3138  ;;  %v1118_v19 = vmul.f32 %v3137_v16, %v3135_v18 }
 0x1ef   : > { %v1117_v21 = vmul.f32 0.0, %v3139_v23  ;;  %v3141_v15 = vpop.eup %3140 }
 0x1f1   : > { %v4135_v26 = vadd.f32 %v1118_v19, %v1117_v21 }
 0x1f3   : > { %3142 = vtanh.f32 %v4135_v26 }
 0x1fd   : > { %v3143_v17 = vpop.eup %3142 }
 0x1fe   : > { %v1121_v24 = vmul.f32 %v3143_v17, %v3141_v15  ;;  %v1220_v17 = vld [vmem:[%s1217_s14 + $0x10] sm:$0xff] }
 0x200   : > { %v1122_v27 = vpack.c.bf16 %v1121_v24, %v1121_v24 }
 0x202   : > { %2796 = vmatmul.mubr.bf16.vlgmr.msra.gmra.mrb[20].mxu0 %v1122_v27  ;;  %1255 = vmatmul.mubr.bf16.vlgmr.msra.gmra.mrb[20].mxu1 %v1122_v27 }
 0x203   : > { %1264 = vmatpush1.bf16.msra.mxu0 %v3895_v37  ;;  %1295 = vmatprep.mubr.bf16.mxu0 %v3529_v0 }
 0x204   : > { %1265 = vmatprep.subr.bf16.mxu0 %v3903_v39  ;;  %2800 = vmatpush3.bf16.msra.mxu1 %v4046_v6 }
 0x205   : > { %2801 = vmatprep.subr.bf16.mxu1 %v3530_v7  ;;  %2815 = vmatprep.mubr.msk.bf16.mxu1 %vm3531_vm0, %v3530_v7 }
 0x207   : > { %1266 = vmatpush1.bf16.msra.mxu0 %v3914_v42 }
 0x208   : > { %1267 = vmatprep.subr.bf16.mxu0 %v3919_v43  ;;  %2802 = vmatpush3.bf16.msra.mxu1 %v4053_v8 }
 0x209   : > { %2803 = vmatprep.subr.bf16.mxu1 %v3530_v7 }
 0x20b   : > { %1268 = vmatpush1.bf16.msra.mxu0 %v3929_v46 }
 0x20c   : > { %1269 = vmatprep.subr.bf16.mxu0 %v3937_v48  ;;  %2804 = vmatpush3.bf16.msra.mxu1 %v4058_v9 }
 0x20d   : > { %2805 = vmatprep.subr.bf16.mxu1 %v3530_v7 }
 0x20f   : > { %1270 = vmatpush1.bf16.msra.mxu0 %v3948_v51 }
 0x210   : > { %1271 = vmatprep.subr.bf16.mxu0 %v3953_v52  ;;  %2806 = vmatpush3.bf16.msra.mxu1 %v4063_v10 }
 0x211   : > { %2807 = vmatprep.subr.bf16.mxu1 %v3530_v7 }
 0x213   : > { %1272 = vmatpush1.bf16.msra.mxu0 %v3963_v55 }
 0x214   : > { %1273 = vmatprep.subr.bf16.mxu0 %v3971_v57  ;;  %2808 = vmatpush3.bf16.msra.mxu1 %v4068_v11 }
 0x215   : > { %2809 = vmatprep.subr.bf16.mxu1 %v3530_v7 }
 0x217   : > { %1274 = vmatpush1.bf16.msra.mxu0 %v3979_v59 }
 0x218   : > { %1275 = vmatprep.subr.bf16.mxu0 %v3987_v61  ;;  %2810 = vmatpush3.bf16.msra.mxu1 %v4072_v12 }
 0x219   : > { %2811 = vmatprep.subr.bf16.mxu1 %v3530_v7 }
 0x21b   : > { %1276 = vmatpush1.bf16.msra.mxu0 %v3997_v1 }
 0x21c   : > { %1277 = vmatprep.subr.bf16.mxu0 %v4005_v3  ;;  %2812 = vmatpush3.bf16.msra.mxu1 %v4079_v13 }
 0x21d   : > { %2813 = vmatprep.subr.bf16.mxu1 %v3530_v7 }
 0x21f   : > { %1278 = vmatpush1.bf16.msra.mxu0 %v4013_v5 }
 0x220   : > { %1384 = vmatprep.subr.bf16.mxu0 %v3886_v33  ;;  %2814 = vmatpush3.bf16.msra.mxu1 %v4084_v14 }
 0x221   : > { %1425 = vmatprep.subr.bf16.mxu1 %v3889_v34 }
 0x222   : > { %1296 = vmatmul.mubr.bf16.vlgmr.msra.gmra.mrb[24].mxu0 %v1122_v27 }
 0x223   : > { %1385 = vmatpush1.bf16.msra.mxu0 %v3892_v36  ;;  %1416 = vmatprep.mubr.bf16.mxu0 %v3529_v0 }
 0x224   : > { %1386 = vmatprep.subr.bf16.mxu0 %v3900_v38 }
 0x227   : > { %1387 = vmatpush1.bf16.msra.mxu0 %v3906_v40 }
 0x228   : > { %1388 = vmatprep.subr.bf16.mxu0 %v3909_v41 }
 0x22b   : > { %1389 = vmatpush1.bf16.msra.mxu0 %v3924_v45 }
 0x22c   : > { %1390 = vmatprep.subr.bf16.mxu0 %v3934_v47 }
 0x22f   : > { %1391 = vmatpush1.bf16.msra.mxu0 %v3940_v49 }
 0x230   : > { %1392 = vmatprep.subr.bf16.mxu0 %v3945_v50 }
 0x233   : > { %1393 = vmatpush1.bf16.msra.mxu0 %v3960_v54 }
 0x234   : > { %1394 = vmatprep.subr.bf16.mxu0 %v3968_v56 }
 0x237   : > { %1395 = vmatpush1.bf16.msra.mxu0 %v3976_v58 }
 0x238   : > { %1396 = vmatprep.subr.bf16.mxu0 %v3984_v60 }
 0x23b   : > { %1397 = vmatpush1.bf16.msra.mxu0 %v3994_v63 }
 0x23c   : > { %1398 = vmatprep.subr.bf16.mxu0 %v4002_v2 }
 0x23f   : > { %1399 = vmatpush1.bf16.msra.mxu0 %v4010_v4 }
 0x240   : > { %2819 = vmatprep.subr.bf16.mxu0 %v3530_v7 }
 0x2d5   : > { %v1205_v25 = vpop.f32.mrb[20].mxu0  ;;  %v1256_v28 = vpop.f32.mrb[20].mxu1 }
 0x2d6   : > { %1213 = vst [vmem:[%s1212_s30] sm:$0xff] %v1205_v25  ;;  %v2797_v29 = vpop.f32.mrb[21].mxu0  ;;  %v1258_v30 = vpop.f32.mrb[21].mxu1  ;;  %v1304_v18 = vadd.f32 %v1256_v28, %v1218_v22  ;;  %v1221_v25 = vld [vmem:[%s1217_s14 + $0x18] sm:$0xff]  ;;  %s4569_s30 = scalar_select %p4789_p12, 5, 2 }
 0x2d7   : > { %v1208_v31 = vpop.f32.mrb[22].mxu0  ;;  %v1260_v32 = vpop.f32.mrb[22].mxu1  ;;  %v1305_v62 = vadd.f32 %v1258_v30, %v1219_v53 }
 0x2d8   : > { %v2798_v35 = vpop.f32.mrb[23].mxu0  ;;  %v1261_v44 = vpop.f32.mrb[23].mxu1  ;;  %v2649_v23 = vmul.f32 -1.442695, %v1304_v18  ;;  %s2703_s14 = sshll.u32 %s4569_s30, 5  ;;  %s2676_s10 = sshll.u32 %s4569_s30, 3 }
 0x2d9   : > { %v2650_v16 = vmul.f32 -1.442695, %v1305_v62  ;;  %s1865_s25 = scalar_lea.vmem [#allocation2], %s2703_s14  ;;  %s2022_s29 = scalar_lea.vmem %s4197_s27, %s2676_s10 [#allocation12] }
 0x2da   : > { %s2349_s14 = scalar_lea.sflag [#allocation5], %s3833_s13 }
 0x2db   : > { %3144 = vpow2.f32 %v2650_v16 }
 0x2dc   : > { %3146 = vpow2.f32 %v2649_v23 }
 0x2e5   : > { %v3145_v19 = vpop.eup %3144 }
 0x2e6   : > { %v3147_v20 = vpop.eup %3146  ;;  %v1317_v21 = vadd.f32 1.0, %v3145_v19 }
 0x2e7   : > { %v1311_v15 = vadd.f32 1.0, %v3147_v20 }
 0x2e8   : > { %3148 = vrcp.f32 %v1317_v21 }
 0x2e9   : > { %3150 = vrcp.f32 %v1311_v15 }
 0x2f2   : > { %v3149_v35 = vpop.eup %3148 }
 0x2f3   : > { %v3151_v44 = vpop.eup %3150  ;;  %v1327_v22 = vmul.f32 %v3149_v35, %v4135_v26 }
 0x2f5   : > { %v1297_v24 = vpop.f32.mrb[24].mxu0 }
 0x2f6   : > { %v1306_v27 = vadd.f32 %v1297_v24, %v1220_v17  ;;  %v1299_v29 = vpop.f32.mrb[25].mxu0  ;;  %v1382_v17 = vld [vmem:[%s1379_s12 + $0x10] sm:$0xff] }
 0x2f7   : > { %v1307_v31 = vadd.f32 %v1299_v29, %v1221_v25  ;;  %v1301_v32 = vpop.f32.mrb[26].mxu0  ;;  %v1383_v25 = vld [vmem:[%s1379_s12 + $0x18] sm:$0xff] }
 0x2f8   : > { %3152 = vtanh.f32 %v1306_v27  ;;  %v1302_v30 = vpop.f32.mrb[27].mxu0 }
 0x2f9   : > { %v2651_v28 = vmul.f32 -1.442695, %v1307_v31 }
 0x2fb   : > { %3154 = vpow2.f32 %v2651_v28 }
 0x302   : > { %v3153_v53 = vpop.eup %3152 }
 0x303   : > { %v1328_v62 = vmul.f32 %v3153_v53, %v3151_v44 }
 0x305   : > { %v3155_v18 = vpop.eup %3154  ;;  %v4202_v16 = vadd.f32 %v1328_v62, %v1327_v22 }
 0x306   : > { %v1324_v23 = vadd.f32 1.0, %v3155_v18 }
 0x307   : > { %3156 = vtanh.f32 %v4202_v16 }
 0x308   : > { %3158 = vrcp.f32 %v1324_v23 }
 0x311   : > { %v3157_v19 = vpop.eup %3156 }
 0x312   : > { %v3159_v20 = vpop.eup %3158 }
 0x313   : > { %v1331_v21 = vmul.f32 %v3159_v20, %v3157_v19 }
 0x315   : > { %v1332_v15 = vpack.c.bf16 %v1331_v21, %v1331_v21 }
 0x317   : > { %2816 = vmatmul.mubr.bf16.vlgmr.msra.gmra.mrb[24].mxu1 %v1332_v15  ;;  %1417 = vmatmul.mubr.bf16.vlgmr.msra.gmra.mrb[28].mxu0 %v1332_v15 }
 0x318   : > { %1426 = vmatpush1.bf16.msra.mxu1 %v3895_v37  ;;  %1457 = vmatprep.mubr.bf16.mxu1 %v3529_v0 }
 0x319   : > { %1427 = vmatprep.subr.bf16.mxu1 %v3903_v39  ;;  %2820 = vmatpush3.bf16.msra.mxu0 %v4046_v6 }
 0x31a   : > { %2821 = vmatprep.subr.bf16.mxu0 %v3530_v7  ;;  %2835 = vmatprep.mubr.msk.bf16.mxu0 %vm3531_vm0, %v3530_v7 }
 0x31c   : > { %1428 = vmatpush1.bf16.msra.mxu1 %v3914_v42  ;;  %v1381_v42 = vld [vmem:[%s1379_s12 + $0x8] sm:$0xff] }
 0x31d   : > { %1429 = vmatprep.subr.bf16.mxu1 %v3919_v43  ;;  %2822 = vmatpush3.bf16.msra.mxu0 %v4053_v8  ;;  %v1380_v43 = vld [vmem:[%s1379_s12] sm:$0xff] }
 0x31e   : > { %2823 = vmatprep.subr.bf16.mxu0 %v3530_v7 }
 0x320   : > { %1430 = vmatpush1.bf16.msra.mxu1 %v3929_v46 }
 0x321   : > { %1431 = vmatprep.subr.bf16.mxu1 %v3937_v48  ;;  %2824 = vmatpush3.bf16.msra.mxu0 %v4058_v9 }
 0x322   : > { %2825 = vmatprep.subr.bf16.mxu0 %v3530_v7 }
 0x324   : > { %1432 = vmatpush1.bf16.msra.mxu1 %v3948_v51 }
 0x325   : > { %1433 = vmatprep.subr.bf16.mxu1 %v3953_v52  ;;  %2826 = vmatpush3.bf16.msra.mxu0 %v4063_v10 }
 0x326   : > { %2827 = vmatprep.subr.bf16.mxu0 %v3530_v7 }
 0x328   : > { %1434 = vmatpush1.bf16.msra.mxu1 %v3963_v55 }
 0x329   : > { %1435 = vmatprep.subr.bf16.mxu1 %v3971_v57  ;;  %2828 = vmatpush3.bf16.msra.mxu0 %v4068_v11 }
 0x32a   : > { %2829 = vmatprep.subr.bf16.mxu0 %v3530_v7 }
 0x32c   : > { %1436 = vmatpush1.bf16.msra.mxu1 %v3979_v59 }
 0x32d   : > { %1437 = vmatprep.subr.bf16.mxu1 %v3987_v61  ;;  %2830 = vmatpush3.bf16.msra.mxu0 %v4072_v12 }
 0x32e   : > { %2831 = vmatprep.subr.bf16.mxu0 %v3530_v7 }
 0x330   : > { %1438 = vmatpush1.bf16.msra.mxu1 %v3997_v1 }
 0x331   : > { %1439 = vmatprep.subr.bf16.mxu1 %v4005_v3  ;;  %2832 = vmatpush3.bf16.msra.mxu0 %v4079_v13 }
 0x332   : > { %2833 = vmatprep.subr.bf16.mxu0 %v3530_v7 }
 0x334   : > { %1440 = vmatpush1.bf16.msra.mxu1 %v4013_v5 }
 0x335   : > { %1546 = vmatprep.subr.bf16.mxu1 %v3886_v33  ;;  %2834 = vmatpush3.bf16.msra.mxu0 %v4084_v14 }
 0x336   : > { %1587 = vmatprep.subr.bf16.mxu0 %v3889_v34 }
 0x337   : > { %1458 = vmatmul.mubr.bf16.vlgmr.msra.gmra.mrb[28].mxu1 %v1332_v15 }
 0x338   : > { %1547 = vmatpush1.bf16.msra.mxu1 %v3892_v36  ;;  %1578 = vmatprep.mubr.bf16.mxu1 %v3529_v0 }
 0x339   : > { %1548 = vmatprep.subr.bf16.mxu1 %v3900_v38 }
 0x33c   : > { %1549 = vmatpush1.bf16.msra.mxu1 %v3906_v40 }
 0x33d   : > { %1550 = vmatprep.subr.bf16.mxu1 %v3909_v41 }
 0x340   : > { %1551 = vmatpush1.bf16.msra.mxu1 %v3924_v45 }
 0x341   : > { %1552 = vmatprep.subr.bf16.mxu1 %v3934_v47 }
 0x344   : > { %1553 = vmatpush1.bf16.msra.mxu1 %v3940_v49 }
 0x345   : > { %1554 = vmatprep.subr.bf16.mxu1 %v3945_v50 }
 0x348   : > { %1555 = vmatpush1.bf16.msra.mxu1 %v3960_v54 }
 0x349   : > { %1556 = vmatprep.subr.bf16.mxu1 %v3968_v56 }
 0x34c   : > { %1557 = vmatpush1.bf16.msra.mxu1 %v3976_v58 }
 0x34d   : > { %1558 = vmatprep.subr.bf16.mxu1 %v3984_v60 }
 0x350   : > { %1559 = vmatpush1.bf16.msra.mxu1 %v3994_v63 }
 0x351   : > { %1560 = vmatprep.subr.bf16.mxu1 %v4002_v2 }
 0x354   : > { %1561 = vmatpush1.bf16.msra.mxu1 %v4010_v4 }
 0x355   : > { %2839 = vmatprep.subr.bf16.mxu1 %v3530_v7 }
 0x3ea   : > { %v1367_v33 = vpop.f32.mrb[24].mxu1  ;;  %v1418_v34 = vpop.f32.mrb[28].mxu0 }
 0x3eb   : > { %1375 = vst [vmem:[%s1374_s7] sm:$0xff] %v1367_v33  ;;  %v2817_v36 = vpop.f32.mrb[25].mxu1  ;;  %v1420_v37 = vpop.f32.mrb[29].mxu0  ;;  %v1466_v46 = vadd.f32 %v1418_v34, %v1380_v43  ;;  %v4269_v34 = vld [vmem:[%s3843_s15 + $0x8] ss:$16 sps:$4 sm:$0xff]   ;;  %s4632_s7 = scalar_select %p4790_p8, 6, 1 }
 0x3ec   : > { %v1370_v38 = vpop.f32.mrb[26].mxu1  ;;  %v1422_v39 = vpop.f32.mrb[30].mxu0  ;;  %v1467_v45 = vadd.f32 %v1420_v37, %v1381_v42  ;;  %v4282_v36 = vld [vmem:[%s3843_s15 + $0x28] ss:$16 sps:$4 sm:$0xff]   ;;  %v4286_v37 = vld [vmem:[%s3843_s15 + $0x4c] ss:$16 sps:$4 sm:$0xff]  }
 0x3ed   : > { %v2818_v40 = vpop.f32.mrb[27].mxu1  ;;  %v1423_v41 = vpop.f32.mrb[31].mxu0  ;;  %v2655_v49 = vmul.f32 -1.442695, %v1466_v46  ;;  %v4292_v38 = vld [vmem:[%s3843_s15 + $0x48] ss:$16 sps:$4 sm:$0xff]  }
 0x3ee   : > { %v2656_v47 = vmul.f32 -1.442695, %v1467_v45  ;;  %v1542_v40 = vld [vmem:[%s1541_s16] sm:$0xff]  ;;  %s2704_s12 = sshll.u32 %s4632_s7, 5  ;;  %s2682_s6 = sshll.u32 %s4632_s7, 3 }
 0x3ef   : > { %s2027_s2 = scalar_lea.vmem [#allocation2], %s2704_s12  ;;  %s2184_s26 = scalar_lea.vmem %s4197_s27, %s2682_s6 [#allocation12] }
 0x3f0   : > { %3160 = vpow2.f32 %v2656_v47 }
 0x3f1   : > { %3162 = vpow2.f32 %v2655_v49 }
 0x3fa   : > { %v3161_v50 = vpop.eup %3160 }
 0x3fb   : > { %v3163_v54 = vpop.eup %3162  ;;  %v1479_v56 = vadd.f32 1.0, %v3161_v50 }
 0x3fc   : > { %v1473_v26 = vadd.f32 1.0, %v3163_v54  ;;  %v1544_v54 = vld [vmem:[%s1541_s16 + $0x10] sm:$0xff] }
 0x3fd   : > { %3164 = vrcp.f32 %v1479_v56 }
 0x3fe   : > { %3166 = vrcp.f32 %v1473_v26 }
 0x407   : > { %v3165_v35 = vpop.eup %3164 }
 0x408   : > { %v3167_v44 = vpop.eup %3166  ;;  %v1489_v22 = vmul.f32 %v3165_v35, %v4202_v16  ;;  %v4274_v16 = vld [vmem:[%s3843_s15 + $0x2c] ss:$16 sps:$4 sm:$0xff]  }
 0x40a   : > { %v1459_v24 = vpop.f32.mrb[28].mxu1 }
 0x40b   : > { %v1468_v27 = vadd.f32 %v1459_v24, %v1382_v17  ;;  %v1461_v29 = vpop.f32.mrb[29].mxu1  ;;  %v1545_v17 = vld [vmem:[%s1541_s16 + $0x18] sm:$0xff] }
 0x40c   : > { %v1469_v31 = vadd.f32 %v1461_v29, %v1383_v25  ;;  %v1463_v32 = vpop.f32.mrb[30].mxu1 }
 0x40d   : > { %3168 = vtanh.f32 %v1468_v27  ;;  %v1464_v30 = vpop.f32.mrb[31].mxu1 }
 0x40e   : > { %v2657_v28 = vmul.f32 -1.442695, %v1469_v31 }
 0x410   : > { %3170 = vpow2.f32 %v2657_v28 }
 0x417   : > { %v3169_v53 = vpop.eup %3168 }
 0x418   : > { %v1490_v62 = vmul.f32 %v3169_v53, %v3167_v44 }
 0x41a   : > { %v3171_v18 = vpop.eup %3170  ;;  %v4265_v23 = vadd.f32 %v1490_v62, %v1489_v22 }
 0x41b   : > { %v1486_v19 = vadd.f32 1.0, %v3171_v18 }
 0x41c   : > { %3172 = vtanh.f32 %v4265_v23 }
 0x41d   : > { %3174 = vrcp.f32 %v1486_v19 }
 0x426   : > { %v3173_v20 = vpop.eup %3172 }
 0x427   : > { %v3175_v21 = vpop.eup %3174 }
 0x428   : > { %v1493_v15 = vmul.f32 %v3175_v21, %v3173_v20 }
 0x42a   : > { %v1494_v33 = vpack.c.bf16 %v1493_v15, %v1493_v15  ;;  %v4395_v15 = vld [vmem:[%s4043_s20 + $0x8] sm:$0xff]  }
 0x42c   : > { %2836 = vmatmul.mubr.bf16.vlgmr.msra.gmra.mrb[32].mxu0 %v1494_v33  ;;  %1579 = vmatmul.mubr.bf16.vlgmr.msra.gmra.mrb[32].mxu1 %v1494_v33 }
 0x42d   : > { %1588 = vmatpush1.bf16.msra.mxu0 %v4269_v34  ;;  %1619 = vmatprep.mubr.bf16.mxu0 %v3529_v0 }
 0x42e   : > { %1589 = vmatprep.subr.bf16.mxu0 %v4274_v16  ;;  %2840 = vmatpush3.bf16.msra.mxu1 %v4046_v6  ;;  %v4358_v6 = vld [vmem:[%s3843_s15 + $0x80] ss:$16 sps:$4 sm:$0xff]  }
 0x42f   : > { %2841 = vmatprep.subr.bf16.mxu1 %v3530_v7  ;;  %2855 = vmatprep.mubr.msk.bf16.mxu1 %vm3531_vm0, %v3530_v7 }
 0x431   : > { %1590 = vmatpush1.bf16.msra.mxu0 %v4282_v36 }
 0x432   : > { %1591 = vmatprep.subr.bf16.mxu0 %v4286_v37  ;;  %2842 = vmatpush3.bf16.msra.mxu1 %v4053_v8  ;;  %v4362_v8 = vld [vmem:[%s3843_s15 + $0xa4] ss:$16 sps:$4 sm:$0xff]  }
 0x433   : > { %2843 = vmatprep.subr.bf16.mxu1 %v3530_v7 }
 0x435   : > { %1592 = vmatpush1.bf16.msra.mxu0 %v4292_v38 }
 0x436   : > { %1593 = vmatprep.subr.bf16.mxu0 %v3937_v48  ;;  %2844 = vmatpush3.bf16.msra.mxu1 %v4058_v9  ;;  %v4316_v48 = vld [vmem:[%s3843_s15 + $0x4] ss:$16 sps:$4 sm:$0xff]  }
 0x437   : > { %2845 = vmatprep.subr.bf16.mxu1 %v3530_v7 }
 0x439   : > { %1594 = vmatpush1.bf16.msra.mxu0 %v3948_v51  ;;  %v4321_v51 = vld [vmem:[%s3843_s15 + $0xc] ss:$16 sps:$4 sm:$0xff]  }
 0x43a   : > { %1595 = vmatprep.subr.bf16.mxu0 %v3953_v52  ;;  %2846 = vmatpush3.bf16.msra.mxu1 %v4063_v10  ;;  %v4325_v52 = vld [vmem:[%s3843_s15] ss:$16 sps:$4 sm:$0xff]  }
 0x43b   : > { %2847 = vmatprep.subr.bf16.mxu1 %v3530_v7 }
 0x43d   : > { %1596 = vmatpush1.bf16.msra.mxu0 %v3963_v55  ;;  %v4330_v55 = vld [vmem:[%s3843_s15 + $0x24] ss:$16 sps:$4 sm:$0xff]  }
 0x43e   : > { %1597 = vmatprep.subr.bf16.mxu0 %v3971_v57  ;;  %2848 = vmatpush3.bf16.msra.mxu1 %v4068_v11  ;;  %v4334_v57 = vld [vmem:[%s3843_s15 + $0x20] ss:$16 sps:$4 sm:$0xff]  }
 0x43f   : > { %2849 = vmatprep.subr.bf16.mxu1 %v3530_v7 }
 0x441   : > { %1598 = vmatpush1.bf16.msra.mxu0 %v3979_v59  ;;  %v4338_v59 = vld [vmem:[%s3843_s15 + $0x44] ss:$16 sps:$4 sm:$0xff]  }
 0x442   : > { %1599 = vmatprep.subr.bf16.mxu0 %v3987_v61  ;;  %2850 = vmatpush3.bf16.msra.mxu1 %v4072_v12  ;;  %v4342_v61 = vld [vmem:[%s3843_s15 + $0x40] ss:$16 sps:$4 sm:$0xff]  }
 0x443   : > { %2851 = vmatprep.subr.bf16.mxu1 %v3530_v7 }
 0x445   : > { %1600 = vmatpush1.bf16.msra.mxu0 %v3997_v1  ;;  %v4346_v1 = vld [vmem:[%s3843_s15 + $0x64] ss:$16 sps:$4 sm:$0xff]  }
 0x446   : > { %1601 = vmatprep.subr.bf16.mxu0 %v4005_v3  ;;  %2852 = vmatpush3.bf16.msra.mxu1 %v4079_v13  ;;  %v4350_v3 = vld [vmem:[%s3843_s15 + $0x60] ss:$16 sps:$4 sm:$0xff]  }
 0x447   : > { %2853 = vmatprep.subr.bf16.mxu1 %v3530_v7 }
 0x449   : > { %1602 = vmatpush1.bf16.msra.mxu0 %v4013_v5  ;;  %v4354_v5 = vld [vmem:[%s3843_s15 + $0x84] ss:$16 sps:$4 sm:$0xff]  }
 0x44a   : > { %1708 = vmatprep.subr.bf16.mxu0 %v4316_v48  ;;  %2854 = vmatpush3.bf16.msra.mxu1 %v4084_v14 }
 0x44b   : > { %1749 = vmatprep.subr.bf16.mxu1 %v4321_v51 }
 0x44c   : > { %1620 = vmatmul.mubr.bf16.vlgmr.msra.gmra.mrb[36].mxu0 %v1494_v33  ;;  %v4401_v33 = vld [vmem:[%s3843_s15 + $0x6c] ss:$16 sps:$4 sm:$0xff]  }
 0x44d   : > { %1709 = vmatpush1.bf16.msra.mxu0 %v4325_v52  ;;  %1740 = vmatprep.mubr.bf16.mxu0 %v3529_v0 }
 0x44e   : > { %1710 = vmatprep.subr.bf16.mxu0 %v4330_v55 }
 0x451   : > { %1711 = vmatpush1.bf16.msra.mxu0 %v4334_v57 }
 0x452   : > { %1712 = vmatprep.subr.bf16.mxu0 %v4338_v59 }
 0x455   : > { %1713 = vmatpush1.bf16.msra.mxu0 %v4342_v61 }
 0x456   : > { %1714 = vmatprep.subr.bf16.mxu0 %v4346_v1 }
 0x459   : > { %1715 = vmatpush1.bf16.msra.mxu0 %v4350_v3 }
 0x45a   : > { %1716 = vmatprep.subr.bf16.mxu0 %v4354_v5 }
 0x45d   : > { %1717 = vmatpush1.bf16.msra.mxu0 %v4358_v6 }
 0x45e   : > { %1718 = vmatprep.subr.bf16.mxu0 %v4362_v8 }
 0x461   : > { %1719 = vmatpush1.bf16.msra.mxu0 %v3976_v58 }
 0x462   : > { %1720 = vmatprep.subr.bf16.mxu0 %v3984_v60 }
 0x465   : > { %1721 = vmatpush1.bf16.msra.mxu0 %v3994_v63 }
 0x466   : > { %1722 = vmatprep.subr.bf16.mxu0 %v4002_v2 }
 0x469   : > { %1723 = vmatpush1.bf16.msra.mxu0 %v4010_v4  ;;  %v1543_v4 = vld [vmem:[%s1541_s16 + $0x8] sm:$0xff] }
 0x46a   : > { %2859 = vmatprep.subr.bf16.mxu0 %v3530_v7 }
 0x4ff   : > { %v1529_v12 = vpop.f32.mrb[32].mxu0  ;;  %v1580_v13 = vpop.f32.mrb[32].mxu1 }
 0x500   : > { %1537 = vst [vmem:[%s1536_s3] sm:$0xff] %v1529_v12  ;;  %v2837_v58 = vpop.f32.mrb[33].mxu0  ;;  %v1582_v60 = vpop.f32.mrb[33].mxu1  ;;  %v1628_v42 = vadd.f32 %v1580_v13, %v1542_v40  ;;  %v4407_v12 = vld [vmem:[%s3843_s15 + $0x68] ss:$16 sps:$4 sm:$0xff]   ;;  %v4411_v13 = vld [vmem:[%s3843_s15 + $0x8c] ss:$16 sps:$4 sm:$0xff]  }
 0x501   : > { %v1532_v14 = vpop.f32.mrb[34].mxu0  ;;  %v1584_v63 = vpop.f32.mrb[34].mxu1  ;;  %v1629_v41 = vadd.f32 %v1582_v60, %v1543_v4  ;;  %v4417_v58 = vld [vmem:[%s3843_s15 + $0x88] ss:$16 sps:$4 sm:$0xff]   ;;  %v4458_v4 = vld [vmem:[%s4043_s20 + $0x38] sm:$0xff]  }
 0x502   : > { %v2838_v39 = vpop.f32.mrb[35].mxu0  ;;  %v1585_v2 = vpop.f32.mrb[35].mxu1  ;;  %v2661_v45 = vmul.f32 -1.442695, %v1628_v42  ;;  %v4427_v60 = vld [vmem:[%s3843_s15 + $0xa8] ss:$16 sps:$4 sm:$0xff]  }
 0x503   : > { %v2662_v43 = vmul.f32 -1.442695, %v1629_v41  ;;  %v4435_v14 = vld [vmem:[%s4043_s20 + $0x28] sm:$0xff]   ;;  %v4440_v63 = vld [vmem:[%s3843_s15 + $0xc8] ss:$16 sps:$4 sm:$0xff]  }
 0x504   : > { %v4448_v39 = vld [vmem:[%s4043_s20 + $0x30] sm:$0xff]   ;;  %v4474_v40 = vld [vmem:[%s3843_s15 + $0xa0] ss:$16 sps:$4 sm:$0xff]   ;;  %v4478_v41 = vld [vmem:[%s3843_s15 + $0xc4] ss:$16 sps:$4 sm:$0xff]  }
 0x505   : > { %3176 = vpow2.f32 %v2662_v43  ;;  %v4453_v2 = vld [vmem:[%s3843_s15 + $0xe8] ss:$16 sps:$4 sm:$0xff]   ;;  %v4482_v42 = vld [vmem:[%s3843_s15 + $0xc0] ss:$16 sps:$4 sm:$0xff]   ;;  %v4486_v43 = vld [vmem:[%s3843_s15 + $0xe4] ss:$16 sps:$4 sm:$0xff]  }
 0x506   : > { %3178 = vpow2.f32 %v2661_v45  ;;  %v4490_v45 = vld [vmem:[%s3843_s15 + $0xe0] ss:$16 sps:$4 sm:$0xff]   ;;  %s4676_s3 = scalar_select %p4791_p11, 7, 0 }
 0x508   : > { %s2705_s16 = sshll.u32 %s4676_s3, 5 }
 0x509   : > { %s2189_s11 = scalar_lea.vmem [#allocation2], %s2705_s16 }
 0x50f   : > { %v3177_v46 = vpop.eup %3176 }
 0x510   : > { %v3179_v47 = vpop.eup %3178  ;;  %v1641_v49 = vadd.f32 1.0, %v3177_v46 }
 0x511   : > { %v1635_v50 = vadd.f32 1.0, %v3179_v47 }
 0x512   : > { %3180 = vrcp.f32 %v1641_v49 }
 0x513   : > { %3182 = vrcp.f32 %v1635_v50 }
 0x51c   : > { %v3181_v32 = vpop.eup %3180 }
 0x51d   : > { %v3183_v30 = vpop.eup %3182  ;;  %v1651_v35 = vmul.f32 %v3181_v32, %v4265_v23  ;;  %v4386_v23 = vld [vmem:[%s4043_s20] sm:$0xff]  }
 0x51f   : > { %v1621_v56 = vpop.f32.mrb[36].mxu0 }
 0x520   : > { %v1630_v26 = vadd.f32 %v1621_v56, %v1544_v54  ;;  %v1623_v24 = vpop.f32.mrb[37].mxu0 }
 0x521   : > { %v1631_v27 = vadd.f32 %v1623_v24, %v1545_v17  ;;  %v1625_v25 = vpop.f32.mrb[38].mxu0 }
 0x522   : > { %3184 = vtanh.f32 %v1630_v26  ;;  %v1626_v29 = vpop.f32.mrb[39].mxu0 }
 0x523   : > { %v2663_v31 = vmul.f32 -1.442695, %v1631_v27 }
 0x525   : > { %3186 = vpow2.f32 %v2663_v31 }
 0x52c   : > { %v3185_v28 = vpop.eup %3184 }
 0x52d   : > { %v1652_v44 = vmul.f32 %v3185_v28, %v3183_v30 }
 0x52f   : > { %v3187_v53 = vpop.eup %3186  ;;  %v4379_v22 = vadd.f32 %v1652_v44, %v1651_v35 }
 0x530   : > { %v1648_v62 = vadd.f32 1.0, %v3187_v53 }
 0x531   : > { %3188 = vtanh.f32 %v4379_v22 }
 0x532   : > { %3190 = vrcp.f32 %v1648_v62 }
 0x53b   : > { %v3189_v18 = vpop.eup %3188 }
 0x53c   : > { %v3191_v19 = vpop.eup %3190 }
 0x53d   : > { %v1655_v20 = vmul.f32 %v3191_v19, %v3189_v18 }
 0x53f   : > { %v1656_v21 = vpack.c.bf16 %v1655_v20, %v1655_v20 }
 0x541   : > { %2856 = vmatmul.mubr.bf16.vlgmr.msra.gmra.mrb[36].mxu1 %v1656_v21  ;;  %1741 = vmatmul.mubr.bf16.vlgmr.msra.gmra.mrb[40].mxu0 %v1656_v21 }
 0x542   : > { %1750 = vmatpush1.bf16.msra.mxu1 %v4269_v34  ;;  %1781 = vmatprep.mubr.bf16.mxu1 %v3529_v0 }
 0x543   : > { %1751 = vmatprep.subr.bf16.mxu1 %v4274_v16  ;;  %2860 = vmatpush3.bf16.msra.mxu0 %v4386_v23 }
 0x544   : > { %2861 = vmatprep.subr.bf16.mxu0 %v3530_v7  ;;  %2875 = vmatprep.mubr.msk.bf16.mxu0 %vm3531_vm0, %v3530_v7 }
 0x546   : > { %1752 = vmatpush1.bf16.msra.mxu1 %v4282_v36 }
 0x547   : > { %1753 = vmatprep.subr.bf16.mxu1 %v4286_v37  ;;  %2862 = vmatpush3.bf16.msra.mxu0 %v4395_v15 }
 0x548   : > { %2863 = vmatprep.subr.bf16.mxu0 %v3530_v7 }
 0x54a   : > { %1754 = vmatpush1.bf16.msra.mxu1 %v4292_v38 }
 0x54b   : > { %1755 = vmatprep.subr.bf16.mxu1 %v4401_v33  ;;  %2864 = vmatpush3.bf16.msra.mxu0 %v4058_v9  ;;  %v4421_v9 = vld [vmem:[%s3843_s15 + $0xac] ss:$16 sps:$4 sm:$0xff]  }
 0x54c   : > { %2865 = vmatprep.subr.bf16.mxu0 %v3530_v7 }
 0x54e   : > { %1756 = vmatpush1.bf16.msra.mxu1 %v4407_v12 }
 0x54f   : > { %1757 = vmatprep.subr.bf16.mxu1 %v4411_v13  ;;  %2866 = vmatpush3.bf16.msra.mxu0 %v4063_v10  ;;  %v4431_v10 = vld [vmem:[%s3843_s15 + $0xcc] ss:$16 sps:$4 sm:$0xff]  }
 0x550   : > { %2867 = vmatprep.subr.bf16.mxu0 %v3530_v7 }
 0x552   : > { %1758 = vmatpush1.bf16.msra.mxu1 %v4417_v58 }
 0x553   : > { %1759 = vmatprep.subr.bf16.mxu1 %v4421_v9  ;;  %2868 = vmatpush3.bf16.msra.mxu0 %v4068_v11  ;;  %v4444_v11 = vld [vmem:[%s3843_s15 + $0xec] ss:$16 sps:$4 sm:$0xff]   ;;  %s1703_s15 = scalar_lea.vmem [#allocation2], %s2702_s24  ;;  %s2362_s24 = sshll.u32 %s4197_s27, 4  ;;  %s4690_s24 = int_to_ptr.vmem [resolvable:$true] %s2362_s24 }
 0x554   : > { %2869 = vmatprep.subr.bf16.mxu0 %v3530_v7  ;;  %v1705_v24 = vld [vmem:[%s1703_s15 + $0x8] sm:$0xff]  ;;  %v1704_v27 = vld [vmem:[%s1703_s15] sm:$0xff]  ;;  %v1706_v53 = vld [vmem:[%s1703_s15 + $0x10] sm:$0xff] }
 0x555   : > { %v1707_v19 = vld [vmem:[%s1703_s15 + $0x18] sm:$0xff] }
 0x556   : > { %1760 = vmatpush1.bf16.msra.mxu1 %v4427_v60 }
 0x557   : > { %1761 = vmatprep.subr.bf16.mxu1 %v4431_v10  ;;  %2870 = vmatpush3.bf16.msra.mxu0 %v4435_v14 }
 0x558   : > { %2871 = vmatprep.subr.bf16.mxu0 %v3530_v7 }
 0x55a   : > { %1762 = vmatpush1.bf16.msra.mxu1 %v4440_v63 }
 0x55b   : > { %1763 = vmatprep.subr.bf16.mxu1 %v4444_v11  ;;  %2872 = vmatpush3.bf16.msra.mxu0 %v4448_v39 }
 0x55c   : > { %2873 = vmatprep.subr.bf16.mxu0 %v3530_v7 }
 0x55e   : > { %1764 = vmatpush1.bf16.msra.mxu1 %v4453_v2 }
 0x55f   : > { %1870 = vmatprep.subr.bf16.mxu1 %v4316_v48  ;;  %2874 = vmatpush3.bf16.msra.mxu0 %v4458_v4 }
 0x560   : > { %1911 = vmatprep.subr.bf16.mxu0 %v4321_v51 }
 0x561   : > { %1782 = vmatmul.mubr.bf16.vlgmr.msra.gmra.mrb[40].mxu1 %v1656_v21 }
 0x562   : > { %1871 = vmatpush1.bf16.msra.mxu1 %v4325_v52  ;;  %1902 = vmatprep.mubr.bf16.mxu1 %v3529_v0 }
 0x563   : > { %1872 = vmatprep.subr.bf16.mxu1 %v4330_v55 }
 0x566   : > { %1873 = vmatpush1.bf16.msra.mxu1 %v4334_v57 }
 0x567   : > { %1874 = vmatprep.subr.bf16.mxu1 %v4338_v59 }
 0x56a   : > { %1875 = vmatpush1.bf16.msra.mxu1 %v4342_v61 }
 0x56b   : > { %1876 = vmatprep.subr.bf16.mxu1 %v4346_v1 }
 0x56e   : > { %1877 = vmatpush1.bf16.msra.mxu1 %v4350_v3 }
 0x56f   : > { %1878 = vmatprep.subr.bf16.mxu1 %v4354_v5 }
 0x572   : > { %1879 = vmatpush1.bf16.msra.mxu1 %v4358_v6 }
 0x573   : > { %1880 = vmatprep.subr.bf16.mxu1 %v4362_v8 }
 0x576   : > { %1881 = vmatpush1.bf16.msra.mxu1 %v4474_v40 }
 0x577   : > { %1882 = vmatprep.subr.bf16.mxu1 %v4478_v41 }
 0x57a   : > { %1883 = vmatpush1.bf16.msra.mxu1 %v4482_v42 }
 0x57b   : > { %1884 = vmatprep.subr.bf16.mxu1 %v4486_v43 }
 0x57e   : > { %1885 = vmatpush1.bf16.msra.mxu1 %v4490_v45 }
 0x57f   : > { %2879 = vmatprep.subr.bf16.mxu1 %v3530_v7 }
 0x614   : > { %v1691_v46 = vpop.f32.mrb[36].mxu1  ;;  %v1742_v47 = vpop.f32.mrb[40].mxu0 }
 0x615   : > { %1699 = vst [vmem:[%s1698_s23] sm:$0xff] %v1691_v46  ;;  %v2857_v49 = vpop.f32.mrb[37].mxu1  ;;  %v1744_v50 = vpop.f32.mrb[41].mxu0  ;;  %v1790_v29 = vadd.f32 %v1742_v47, %v1704_v27  ;;  %s2706_s23 = sshll.u32 %s3699_s28, 10  ;;  %s3532_s28 = smov [#allocation12]  }
 0x616   : > { %v1694_v54 = vpop.f32.mrb[38].mxu1  ;;  %v1746_v56 = vpop.f32.mrb[42].mxu0  ;;  %v1791_v25 = vadd.f32 %v1744_v50, %v1705_v24 }
 0x617   : > { %v2858_v26 = vpop.f32.mrb[39].mxu1  ;;  %v1747_v17 = vpop.f32.mrb[43].mxu0  ;;  %v2667_v32 = vmul.f32 -1.442695, %v1790_v29 }
 0x618   : > { %v2668_v31 = vmul.f32 -1.442695, %v1791_v25 }
 0x61a   : > { %3192 = vpow2.f32 %v2668_v31 }
 0x61b   : > { %3194 = vpow2.f32 %v2667_v32 }
 0x624   : > { %v3193_v30 = vpop.eup %3192 }
 0x625   : > { %v3195_v28 = vpop.eup %3194  ;;  %v1803_v35 = vadd.f32 1.0, %v3193_v30 }
 0x626   : > { %v1797_v44 = vadd.f32 1.0, %v3195_v28  ;;  %v4526_v28 = vld [vmem:[%s4043_s20 + $0x18] sm:$0xff]  }
 0x627   : > { %3196 = vrcp.f32 %v1803_v35  ;;  %v4533_v35 = vld [vmem:[%s4043_s20 + $0x20] sm:$0xff]  }
 0x628   : > { %3198 = vrcp.f32 %v1797_v44 }
 0x631   : > { %v3197_v50 = vpop.eup %3196 }
 0x632   : > { %v3199_v54 = vpop.eup %3198  ;;  %v1813_v26 = vmul.f32 %v3197_v50, %v4379_v22  ;;  %v4519_v22 = vld [vmem:[%s4043_s20 + $0x10] sm:$0xff]   ;;  %s2670_s20 = sshll.u32 %s4497_s17, 3  ;;  %s2688_s17 = sshll.u32 %s4676_s3, 3 }
 0x633   : > { %s1860_s8 = scalar_lea.vmem %s4197_s27, %s2670_s20 [#allocation12]  ;;  %s2346_s15 = scalar_lea.vmem %s4197_s27, %s2688_s17 [#allocation12] }
 0x634   : > { %v1783_v62 = vpop.f32.mrb[40].mxu1  ;;  %s3448_s27 = sshll.u32 %s3532_s28, 4  ;;  %s3449_s27 = int_to_ptr.vmem [resolvable:$false] %s3448_s27 }
 0x635   : > { %v1792_v18 = vadd.f32 %v1783_v62, %v1706_v53  ;;  %v1785_v20 = vpop.f32.mrb[41].mxu1  ;;  %s3450_s10 = scalar_lea.vmem %s3449_s27, 2048  ;;  %p3451_p0 = scmp.lt.s32.totalorder %s4690_s24, %s3449_s27 }
 0x636   : > { %v1793_v21 = vadd.f32 %v1785_v20, %v1707_v19  ;;  %v1787_v46 = vpop.f32.mrb[42].mxu1 }
 0x637   : > { %3200 = vtanh.f32 %v1792_v18  ;;  %v1788_v49 = vpop.f32.mrb[43].mxu1 }
 0x638   : > { %v2669_v47 = vmul.f32 -1.442695, %v1793_v21  ;;  %v1867_v49 = vld [vmem:[%s1865_s25 + $0x8] sm:$0xff] }
 0x63a   : > { %3202 = vpow2.f32 %v2669_v47  ;;  %v1866_v47 = vld [vmem:[%s1865_s25] sm:$0xff] }
 0x641   : > { %v3201_v56 = vpop.eup %3200 }
 0x642   : > { %v1814_v17 = vmul.f32 %v3201_v56, %v3199_v54 }
 0x644   : > { %v3203_v24 = vpop.eup %3202  ;;  %v4502_v27 = vadd.f32 %v1814_v17, %v1813_v26 }
 0x645   : > { %v1810_v25 = vadd.f32 1.0, %v3203_v24 }
 0x646   : > { %3204 = vtanh.f32 %v4502_v27 }
 0x647   : > { %3206 = vrcp.f32 %v1810_v25 }
 0x650   : > { %v3205_v29 = vpop.eup %3204 }
 0x651   : > { %v3207_v31 = vpop.eup %3206 }
 0x652   : > { %v1817_v32 = vmul.f32 %v3207_v31, %v3205_v29  ;;  %v1868_v31 = vld [vmem:[%s1865_s25 + $0x10] sm:$0xff] }
 0x654   : > { %v1818_v30 = vpack.c.bf16 %v1817_v32, %v1817_v32 }
 0x656   : > { %2876 = vmatmul.mubr.bf16.vlgmr.msra.gmra.mrb[44].mxu0 %v1818_v30  ;;  %1903 = vmatmul.mubr.bf16.vlgmr.msra.gmra.mrb[44].mxu1 %v1818_v30 }
 0x657   : > { %1912 = vmatpush1.bf16.msra.mxu0 %v4269_v34  ;;  %1943 = vmatprep.mubr.bf16.mxu0 %v3529_v0 }
 0x658   : > { %1913 = vmatprep.subr.bf16.mxu0 %v4274_v16  ;;  %2880 = vmatpush3.bf16.msra.mxu1 %v4386_v23 }
 0x659   : > { %2881 = vmatprep.subr.bf16.mxu1 %v3530_v7  ;;  %2895 = vmatprep.mubr.msk.bf16.mxu1 %vm3531_vm0, %v3530_v7 }
 0x65b   : > { %1914 = vmatpush1.bf16.msra.mxu0 %v4282_v36 }
 0x65c   : > { %1915 = vmatprep.subr.bf16.mxu0 %v4286_v37  ;;  %2882 = vmatpush3.bf16.msra.mxu1 %v4395_v15 }
 0x65d   : > { %2883 = vmatprep.subr.bf16.mxu1 %v3530_v7 }
 0x65f   : > { %1916 = vmatpush1.bf16.msra.mxu0 %v4292_v38 }
 0x660   : > { %1917 = vmatprep.subr.bf16.mxu0 %v4401_v33  ;;  %2884 = vmatpush3.bf16.msra.mxu1 %v4519_v22 }
 0x661   : > { %2885 = vmatprep.subr.bf16.mxu1 %v3530_v7 }
 0x663   : > { %1918 = vmatpush1.bf16.msra.mxu0 %v4407_v12 }
 0x664   : > { %1919 = vmatprep.subr.bf16.mxu0 %v4411_v13  ;;  %2886 = vmatpush3.bf16.msra.mxu1 %v4526_v28 }
 0x665   : > { %2887 = vmatprep.subr.bf16.mxu1 %v3530_v7 }
 0x667   : > { %1920 = vmatpush1.bf16.msra.mxu0 %v4417_v58 }
 0x668   : > { %1921 = vmatprep.subr.bf16.mxu0 %v4421_v9  ;;  %2888 = vmatpush3.bf16.msra.mxu1 %v4533_v35 }
 0x669   : > { %2889 = vmatprep.subr.bf16.mxu1 %v3530_v7 }
 0x66b   : > { %1922 = vmatpush1.bf16.msra.mxu0 %v4427_v60 }
 0x66c   : > { %1923 = vmatprep.subr.bf16.mxu0 %v4431_v10  ;;  %2890 = vmatpush3.bf16.msra.mxu1 %v4435_v14 }
 0x66d   : > { %2891 = vmatprep.subr.bf16.mxu1 %v3530_v7 }
 0x66f   : > { %1924 = vmatpush1.bf16.msra.mxu0 %v4440_v63 }
 0x670   : > { %1925 = vmatprep.subr.bf16.mxu0 %v4444_v11  ;;  %2892 = vmatpush3.bf16.msra.mxu1 %v4448_v39 }
 0x671   : > { %2893 = vmatprep.subr.bf16.mxu1 %v3530_v7 }
 0x673   : > { %1926 = vmatpush1.bf16.msra.mxu0 %v4453_v2 }
 0x674   : > { %2032 = vmatprep.subr.bf16.mxu0 %v4316_v48  ;;  %2894 = vmatpush3.bf16.msra.mxu1 %v4458_v4 }
 0x675   : > { %2073 = vmatprep.subr.bf16.mxu1 %v4321_v51 }
 0x676   : > { %1944 = vmatmul.mubr.bf16.vlgmr.msra.gmra.mrb[48].mxu0 %v1818_v30 }
 0x677   : > { %2033 = vmatpush1.bf16.msra.mxu0 %v4325_v52  ;;  %2064 = vmatprep.mubr.bf16.mxu0 %v3529_v0 }
 0x678   : > { %2034 = vmatprep.subr.bf16.mxu0 %v4330_v55 }
 0x67b   : > { %2035 = vmatpush1.bf16.msra.mxu0 %v4334_v57 }
 0x67c   : > { %2036 = vmatprep.subr.bf16.mxu0 %v4338_v59 }
 0x67f   : > { %2037 = vmatpush1.bf16.msra.mxu0 %v4342_v61 }
 0x680   : > { %2038 = vmatprep.subr.bf16.mxu0 %v4346_v1 }
 0x683   : > { %2039 = vmatpush1.bf16.msra.mxu0 %v4350_v3 }
 0x684   : > { %2040 = vmatprep.subr.bf16.mxu0 %v4354_v5 }
 0x687   : > { %2041 = vmatpush1.bf16.msra.mxu0 %v4358_v6 }
 0x688   : > { %2042 = vmatprep.subr.bf16.mxu0 %v4362_v8 }
 0x68b   : > { %2043 = vmatpush1.bf16.msra.mxu0 %v4474_v40 }
 0x68c   : > { %2044 = vmatprep.subr.bf16.mxu0 %v4478_v41 }
 0x68f   : > { %2045 = vmatpush1.bf16.msra.mxu0 %v4482_v42 }
 0x690   : > { %2046 = vmatprep.subr.bf16.mxu0 %v4486_v43 }
 0x693   : > { %2047 = vmatpush1.bf16.msra.mxu0 %v4490_v45 }
 0x694   : > { %2899 = vmatprep.subr.bf16.mxu0 %v3530_v7 }
 0x729   : > { %v1853_v44 = vpop.f32.mrb[44].mxu0  ;;  %v1904_v53 = vpop.f32.mrb[44].mxu1 }
 0x72a   : > { %1861 = vst [vmem:[%s1860_s8] sm:$0xff] %v1853_v44  ;;  %v2877_v62 = vpop.f32.mrb[45].mxu0  ;;  %v1906_v18 = vpop.f32.mrb[45].mxu1  ;;  %v1952_v54 = vadd.f32 %v1904_v53, %v1866_v47  ;;  %v1869_v44 = vld [vmem:[%s1865_s25 + $0x18] sm:$0xff]  ;;  %s4688_s8 = scalar_lea.hbm %s4739_s5, %s2706_s23  ;;  %s3444_s25 = scalar_lea.vmem %s4690_s24, 1024 }
 0x72b   : > { %v1856_v19 = vpop.f32.mrb[46].mxu0  ;;  %v1908_v20 = vpop.f32.mrb[46].mxu1  ;;  %v1953_v50 = vadd.f32 %v1906_v18, %v1867_v49  ;;  %p3445_p3 = scmp.ne.s32.totalorder %s4690_s24, %s3444_s25  ;;  %p3452_p6 = scmp.lt.s32.totalorder %s3450_s10, %s3444_s25 }
 0x72c   : > { %v2878_v21 = vpop.f32.mrb[47].mxu0  ;;  %v1909_v46 = vpop.f32.mrb[47].mxu1  ;;  %v2673_v26 = vmul.f32 -1.442695, %v1952_v54 }
 0x72d   : > { %v2674_v56 = vmul.f32 -1.442695, %v1953_v50  ;;  %p3446_p13 = pnand %p3445_p3, %p4792_p7  ;;  %p3453_p2 = por %p3452_p6, %p3451_p0 }
 0x72f   : > { %3208 = vpow2.f32 %v2674_v56  ;;  %p3447_p1 = pneg %p3446_p13 }
 0x730   : > { %3210 = vpow2.f32 %v2673_v26 }
 0x731   : > { %p3454_p9 = pnand %p3453_p2, %p3447_p1 }
 0x739   : > { %v3209_v17 = vpop.eup %3208 }
 0x73a   : > { %v3211_v24 = vpop.eup %3210  ;;  %v1965_v25 = vadd.f32 1.0, %v3209_v17 }
 0x73b   : > { %v1959_v29 = vadd.f32 1.0, %v3211_v24 }
 0x73c   : > { %3212 = vrcp.f32 %v1965_v25 }
 0x73d   : > { %3214 = vrcp.f32 %v1959_v29 }
 0x746   : > { %v3213_v21 = vpop.eup %3212 }
 0x747   : > { %v3215_v46 = vpop.eup %3214  ;;  %v1975_v47 = vmul.f32 %v3213_v21, %v4502_v27 }
 0x749   : > { %v1945_v32 = vpop.f32.mrb[48].mxu0 }
 0x74a   : > { %v1954_v30 = vadd.f32 %v1945_v32, %v1868_v31  ;;  %v1947_v62 = vpop.f32.mrb[49].mxu0  ;;  %v2030_v31 = vld [vmem:[%s2027_s2 + $0x10] sm:$0xff] }
 0x74b   : > { %v1955_v19 = vadd.f32 %v1947_v62, %v1869_v44  ;;  %v1949_v20 = vpop.f32.mrb[50].mxu0  ;;  %v2031_v44 = vld [vmem:[%s2027_s2 + $0x18] sm:$0xff] }
 0x74c   : > { %3216 = vtanh.f32 %v1954_v30  ;;  %v1950_v18 = vpop.f32.mrb[51].mxu0 }
 0x74d   : > { %v2675_v53 = vmul.f32 -1.442695, %v1955_v19 }
 0x74f   : > { %3218 = vpow2.f32 %v2675_v53 }
 0x756   : > { %v3217_v49 = vpop.eup %3216 }
 0x757   : > { %v1976_v50 = vmul.f32 %v3217_v49, %v3215_v46 }
 0x759   : > { %v3219_v54 = vpop.eup %3218  ;;  %v4574_v56 = vadd.f32 %v1976_v50, %v1975_v47 }
 0x75a   : > { %v1972_v26 = vadd.f32 1.0, %v3219_v54 }
 0x75b   : > { %3220 = vtanh.f32 %v4574_v56 }
 0x75c   : > { %3222 = vrcp.f32 %v1972_v26 }
 0x765   : > { %v3221_v17 = vpop.eup %3220 }
 0x766   : > { %v3223_v24 = vpop.eup %3222 }
 0x767   : > { %v1979_v25 = vmul.f32 %v3223_v24, %v3221_v17 }
 0x769   : > { %v1980_v29 = vpack.c.bf16 %v1979_v25, %v1979_v25 }
 0x76b   : > { %2896 = vmatmul.mubr.bf16.vlgmr.msra.gmra.mrb[48].mxu1 %v1980_v29  ;;  %2065 = vmatmul.mubr.bf16.vlgmr.msra.gmra.mrb[52].mxu0 %v1980_v29 }
 0x76c   : > { %2074 = vmatpush1.bf16.msra.mxu1 %v4269_v34  ;;  %2105 = vmatprep.mubr.bf16.mxu1 %v3529_v0 }
 0x76d   : > { %2075 = vmatprep.subr.bf16.mxu1 %v4274_v16  ;;  %2900 = vmatpush3.bf16.msra.mxu0 %v4386_v23 }
 0x76e   : > { %2901 = vmatprep.subr.bf16.mxu0 %v3530_v7  ;;  %2915 = vmatprep.mubr.msk.bf16.mxu0 %vm3531_vm0, %v3530_v7 }
 0x770   : > { %2076 = vmatpush1.bf16.msra.mxu1 %v4282_v36 }
 0x771   : > { %2077 = vmatprep.subr.bf16.mxu1 %v4286_v37  ;;  %2902 = vmatpush3.bf16.msra.mxu0 %v4395_v15 }
 0x772   : > { %2903 = vmatprep.subr.bf16.mxu0 %v3530_v7 }
 0x774   : > { %2078 = vmatpush1.bf16.msra.mxu1 %v4292_v38 }
 0x775   : > { %2079 = vmatprep.subr.bf16.mxu1 %v4401_v33  ;;  %2904 = vmatpush3.bf16.msra.mxu0 %v4519_v22 }
 0x776   : > { %2905 = vmatprep.subr.bf16.mxu0 %v3530_v7 }
 0x778   : > { %2080 = vmatpush1.bf16.msra.mxu1 %v4407_v12 }
 0x779   : > { %2081 = vmatprep.subr.bf16.mxu1 %v4411_v13  ;;  %2906 = vmatpush3.bf16.msra.mxu0 %v4526_v28 }
 0x77a   : > { %2907 = vmatprep.subr.bf16.mxu0 %v3530_v7 }
 0x77c   : > { %2082 = vmatpush1.bf16.msra.mxu1 %v4417_v58 }
 0x77d   : > { %2083 = vmatprep.subr.bf16.mxu1 %v4421_v9  ;;  %2908 = vmatpush3.bf16.msra.mxu0 %v4533_v35 }
 0x77e   : > { %2909 = vmatprep.subr.bf16.mxu0 %v3530_v7 }
 0x780   : > { %2084 = vmatpush1.bf16.msra.mxu1 %v4427_v60 }
 0x781   : > { %2085 = vmatprep.subr.bf16.mxu1 %v4431_v10  ;;  %2910 = vmatpush3.bf16.msra.mxu0 %v4435_v14 }
 0x782   : > { %2911 = vmatprep.subr.bf16.mxu0 %v3530_v7 }
 0x784   : > { %2086 = vmatpush1.bf16.msra.mxu1 %v4440_v63 }
 0x785   : > { %2087 = vmatprep.subr.bf16.mxu1 %v4444_v11  ;;  %2912 = vmatpush3.bf16.msra.mxu0 %v4448_v39 }
 0x786   : > { %2913 = vmatprep.subr.bf16.mxu0 %v3530_v7 }
 0x788   : > { %2088 = vmatpush1.bf16.msra.mxu1 %v4453_v2 }
 0x789   : > { %2194 = vmatprep.subr.bf16.mxu1 %v4316_v48  ;;  %2914 = vmatpush3.bf16.msra.mxu0 %v4458_v4 }
 0x78a   : > { %2235 = vmatprep.subr.bf16.mxu0 %v4321_v51 }
 0x78b   : > { %2106 = vmatmul.mubr.bf16.vlgmr.msra.gmra.mrb[52].mxu1 %v1980_v29 }
 0x78c   : > { %2195 = vmatpush1.bf16.msra.mxu1 %v4325_v52  ;;  %2226 = vmatprep.mubr.bf16.mxu1 %v3529_v0 }
 0x78d   : > { %2196 = vmatprep.subr.bf16.mxu1 %v4330_v55 }
 0x790   : > { %2197 = vmatpush1.bf16.msra.mxu1 %v4334_v57 }
 0x791   : > { %2198 = vmatprep.subr.bf16.mxu1 %v4338_v59 }
 0x794   : > { %2199 = vmatpush1.bf16.msra.mxu1 %v4342_v61 }
 0x795   : > { %2200 = vmatprep.subr.bf16.mxu1 %v4346_v1 }
 0x798   : > { %2201 = vmatpush1.bf16.msra.mxu1 %v4350_v3  ;;  %v2029_v3 = vld [vmem:[%s2027_s2 + $0x8] sm:$0xff] }
 0x799   : > { %2202 = vmatprep.subr.bf16.mxu1 %v4354_v5  ;;  %v2028_v5 = vld [vmem:[%s2027_s2] sm:$0xff] }
 0x79c   : > { %2203 = vmatpush1.bf16.msra.mxu1 %v4358_v6 }
 0x79d   : > { %2204 = vmatprep.subr.bf16.mxu1 %v4362_v8 }
 0x7a0   : > { %2205 = vmatpush1.bf16.msra.mxu1 %v4474_v40 }
 0x7a1   : > { %2206 = vmatprep.subr.bf16.mxu1 %v4478_v41 }
 0x7a4   : > { %2207 = vmatpush1.bf16.msra.mxu1 %v4482_v42 }
 0x7a5   : > { %2208 = vmatprep.subr.bf16.mxu1 %v4486_v43 }
 0x7a8   : > { %2209 = vmatpush1.bf16.msra.mxu1 %v4490_v45 }
 0x7a9   : > { %2919 = vmatprep.subr.bf16.mxu1 %v3530_v7 }
 0x83e   : > { %v2015_v48 = vpop.f32.mrb[48].mxu1  ;;  %v2066_v51 = vpop.f32.mrb[52].mxu0 }
 0x83f   : > { %2023 = vst [vmem:[%s2022_s29] sm:$0xff] %v2015_v48  ;;  %v2897_v52 = vpop.f32.mrb[49].mxu1  ;;  %v2068_v55 = vpop.f32.mrb[53].mxu0  ;;  %v2114_v8 = vadd.f32 %v2066_v51, %v2028_v5 }
 0x840   : > { %v2018_v57 = vpop.f32.mrb[50].mxu1  ;;  %v2070_v59 = vpop.f32.mrb[54].mxu0  ;;  %v2115_v6 = vadd.f32 %v2068_v55, %v2029_v3 }
 0x841   : > { %v2898_v61 = vpop.f32.mrb[51].mxu1  ;;  %v2071_v1 = vpop.f32.mrb[55].mxu0  ;;  %v2679_v41 = vmul.f32 -1.442695, %v2114_v8 }
 0x842   : > { %v2680_v40 = vmul.f32 -1.442695, %v2115_v6 }
 0x844   : > { %3224 = vpow2.f32 %v2680_v40 }
 0x845   : > { %3226 = vpow2.f32 %v2679_v41 }
 0x84e   : > { %v3225_v42 = vpop.eup %3224 }
 0x84f   : > { %v3227_v43 = vpop.eup %3226  ;;  %v2127_v45 = vadd.f32 1.0, %v3225_v42 }
 0x850   : > { %v2121_v27 = vadd.f32 1.0, %v3227_v43 }
 0x851   : > { %3228 = vrcp.f32 %v2127_v45 }
 0x852   : > { %3230 = vrcp.f32 %v2121_v27 }
 0x85b   : > { %v3229_v21 = vpop.eup %3228 }
 0x85c   : > { %v3231_v46 = vpop.eup %3230  ;;  %v2137_v47 = vmul.f32 %v3229_v21, %v4574_v56 }
 0x85e   : > { %v2107_v32 = vpop.f32.mrb[52].mxu1 }
 0x85f   : > { %v2116_v30 = vadd.f32 %v2107_v32, %v2030_v31  ;;  %v2109_v62 = vpop.f32.mrb[53].mxu1 }
 0x860   : > { %v2117_v19 = vadd.f32 %v2109_v62, %v2031_v44  ;;  %v2111_v20 = vpop.f32.mrb[54].mxu1 }
 0x861   : > { %3232 = vtanh.f32 %v2116_v30  ;;  %v2112_v18 = vpop.f32.mrb[55].mxu1 }
 0x862   : > { %v2681_v53 = vmul.f32 -1.442695, %v2117_v19 }
 0x864   : > { %3234 = vpow2.f32 %v2681_v53 }
 0x86b   : > { %v3233_v49 = vpop.eup %3232 }
 0x86c   : > { %v2138_v50 = vmul.f32 %v3233_v49, %v3231_v46 }
 0x86e   : > { %v3235_v54 = vpop.eup %3234  ;;  %v4637_v26 = vadd.f32 %v2138_v50, %v2137_v47 }
 0x86f   : > { %v2134_v17 = vadd.f32 1.0, %v3235_v54 }
 0x870   : > { %3236 = vtanh.f32 %v4637_v26 }
 0x871   : > { %3238 = vrcp.f32 %v2134_v17 }
 0x87a   : > { %v3237_v24 = vpop.eup %3236 }
 0x87b   : > { %v3239_v25 = vpop.eup %3238 }
 0x87c   : > { %v2141_v29 = vmul.f32 %v3239_v25, %v3237_v24 }
 0x87e   : > { %v2142_v48 = vpack.c.bf16 %v2141_v29, %v2141_v29 }
 0x880   : > { %2916 = vmatmul.mubr.bf16.vlgmr.msra.gmra.mrb[56].mxu0 %v2142_v48  ;;  %2227 = vmatmul.mubr.bf16.vlgmr.msra.gmra.mrb[56].mxu1 %v2142_v48 }
 0x881   : > { %2236 = vmatpush1.bf16.msra.mxu0 %v4269_v34  ;;  %2267 = vmatprep.mubr.bf16.mxu0 %v3529_v0 }
 0x882   : > { %2237 = vmatprep.subr.bf16.mxu0 %v4274_v16  ;;  %2920 = vmatpush3.bf16.msra.mxu1 %v4386_v23 }
 0x883   : > { %2921 = vmatprep.subr.bf16.mxu1 %v3530_v7  ;;  %2935 = vmatprep.mubr.msk.bf16.mxu1 %vm3531_vm0, %v3530_v7 }
 0x885   : > { %2238 = vmatpush1.bf16.msra.mxu0 %v4282_v36 }
 0x886   : > { %2239 = vmatprep.subr.bf16.mxu0 %v4286_v37  ;;  %2922 = vmatpush3.bf16.msra.mxu1 %v4395_v15  ;;  %v2191_v15 = vld [vmem:[%s2189_s11 + $0x8] sm:$0xff] }
 0x887   : > { %2923 = vmatprep.subr.bf16.mxu1 %v3530_v7 }
 0x889   : > { %2240 = vmatpush1.bf16.msra.mxu0 %v4292_v38 }
 0x88a   : > { %2241 = vmatprep.subr.bf16.mxu0 %v4401_v33  ;;  %2924 = vmatpush3.bf16.msra.mxu1 %v4519_v22  ;;  %v2190_v33 = vld [vmem:[%s2189_s11] sm:$0xff] }
 0x88b   : > { %2925 = vmatprep.subr.bf16.mxu1 %v3530_v7 }
 0x88d   : > { %2242 = vmatpush1.bf16.msra.mxu0 %v4407_v12 }
 0x88e   : > { %2243 = vmatprep.subr.bf16.mxu0 %v4411_v13  ;;  %2926 = vmatpush3.bf16.msra.mxu1 %v4526_v28 }
 0x88f   : > { %2927 = vmatprep.subr.bf16.mxu1 %v3530_v7 }
 0x891   : > { %2244 = vmatpush1.bf16.msra.mxu0 %v4417_v58 }
 0x892   : > { %2245 = vmatprep.subr.bf16.mxu0 %v4421_v9  ;;  %2928 = vmatpush3.bf16.msra.mxu1 %v4533_v35 }
 0x893   : > { %2929 = vmatprep.subr.bf16.mxu1 %v3530_v7 }
 0x895   : > { %2246 = vmatpush1.bf16.msra.mxu0 %v4427_v60 }
 0x896   : > { %2247 = vmatprep.subr.bf16.mxu0 %v4431_v10  ;;  %2930 = vmatpush3.bf16.msra.mxu1 %v4435_v14 }
 0x897   : > { %2931 = vmatprep.subr.bf16.mxu1 %v3530_v7 }
 0x899   : > { %2248 = vmatpush1.bf16.msra.mxu0 %v4440_v63 }
 0x89a   : > { %2249 = vmatprep.subr.bf16.mxu0 %v4444_v11  ;;  %2932 = vmatpush3.bf16.msra.mxu1 %v4448_v39  ;;  %v2192_v11 = vld [vmem:[%s2189_s11 + $0x10] sm:$0xff] }
 0x89b   : > { %2933 = vmatprep.subr.bf16.mxu1 %v3530_v7 }
 0x89d   : > { %2250 = vmatpush1.bf16.msra.mxu0 %v4453_v2 }
 0x89e   : > { %2934 = vmatpush3.bf16.msra.mxu1 %v4458_v4  ;;  %v2193_v4 = vld [vmem:[%s2189_s11 + $0x18] sm:$0xff] }
 0x8a0   : > { %2268 = vmatmul.mubr.bf16.vlgmr.msra.gmra.mrb[60].mxu0 %v2142_v48 }
 0x953   : > { %v2177_v0 = vpop.f32.mrb[56].mxu0  ;;  %v2228_v34 = vpop.f32.mrb[56].mxu1 }
 0x954   : > { %2185 = vst [vmem:[%s2184_s26] sm:$0xff] %v2177_v0  ;;  %v2917_v16 = vpop.f32.mrb[57].mxu0  ;;  %v2230_v36 = vpop.f32.mrb[57].mxu1  ;;  %v2276_v13 = vadd.f32 %v2228_v34, %v2190_v33 }
 0x955   : > { %v2180_v37 = vpop.f32.mrb[58].mxu0  ;;  %v2232_v38 = vpop.f32.mrb[58].mxu1  ;;  %v2277_v12 = vadd.f32 %v2230_v36, %v2191_v15 }
 0x956   : > { %v2918_v7 = vpop.f32.mrb[59].mxu0  ;;  %v2233_v23 = vpop.f32.mrb[59].mxu1  ;;  %v2685_v9 = vmul.f32 -1.442695, %v2276_v13 }
 0x957   : > { %v2686_v58 = vmul.f32 -1.442695, %v2277_v12 }
 0x959   : > { %3240 = vpow2.f32 %v2686_v58 }
 0x95a   : > { %3242 = vpow2.f32 %v2685_v9 }
 0x963   : > { %v3241_v60 = vpop.eup %3240 }
 0x964   : > { %v3243_v10 = vpop.eup %3242  ;;  %v2289_v14 = vadd.f32 1.0, %v3241_v60 }
 0x965   : > { %v2283_v63 = vadd.f32 1.0, %v3243_v10 }
 0x966   : > { %3244 = vrcp.f32 %v2289_v14 }
 0x967   : > { %3246 = vrcp.f32 %v2283_v63 }
 0x970   : > { %v3245_v52 = vpop.eup %3244 }
 0x971   : > { %v3247_v55 = vpop.eup %3246  ;;  %v2299_v59 = vmul.f32 %v3245_v52, %v4637_v26 }
 0x973   : > { %v2269_v39 = vpop.f32.mrb[60].mxu0 }
 0x974   : > { %v2278_v2 = vadd.f32 %v2269_v39, %v2192_v11  ;;  %v2271_v22 = vpop.f32.mrb[61].mxu0 }
 0x975   : > { %v2279_v28 = vadd.f32 %v2271_v22, %v2193_v4  ;;  %v2273_v35 = vpop.f32.mrb[62].mxu0 }
 0x976   : > { %3248 = vtanh.f32 %v2278_v2  ;;  %v2274_v56 = vpop.f32.mrb[63].mxu0 }
 0x977   : > { %v2687_v51 = vmul.f32 -1.442695, %v2279_v28 }
 0x979   : > { %3250 = vpow2.f32 %v2687_v51 }
 0x980   : > { %v3249_v57 = vpop.eup %3248 }
 0x981   : > { %v2300_v61 = vmul.f32 %v3249_v57, %v3247_v55 }
 0x983   : > { %v3251_v1 = vpop.eup %3250  ;;  %v2301_v3 = vadd.f32 %v2300_v61, %v2299_v59 }
 0x984   : > { %v2296_v5 = vadd.f32 1.0, %v3251_v1 }
 0x985   : > { %3252 = vtanh.f32 %v2301_v3 }
 0x986   : > { %3254 = vrcp.f32 %v2296_v5 }
 0x98f   : > { %v3253_v6 = vpop.eup %3252 }
 0x990   : > { %v3255_v8 = vpop.eup %3254 }
 0x991   : > { %v2303_v40 = vmul.f32 %v3255_v8, %v3253_v6 }
 0x993   : > { %v2304_v41 = vpack.c.bf16 %v2303_v40, %v2303_v40 }
 0x995   : > { %2936 = vmatmul.mubr.bf16.vlgmr.msra.gmra.mrb[60].mxu1 %v2304_v41 }
 0xa68   : > { %v2339_v42 = vpop.f32.mrb[60].mxu1 }
 0xa69   : > { %2347 = vst [vmem:[%s2346_s15] sm:$0xff] %v2339_v42  ;;  %v2937_v43 = vpop.f32.mrb[61].mxu1 }
 0xa6a   : > { %v2342_v45 = vpop.f32.mrb[62].mxu1 }
 0xa6b   : > { %3457 = shalt.err (!%p3454_p9)
}
 0xa6c   : > { %s3458_s7 = scalar_lea.hbm %s4688_s8, 1024  ;;  %s3462_s2 = scalar_lea.hbm %s4739_s5, 2048 }
 0xa6d   : > { %p3459_p4 = scmp.ne.s32.totalorder %s4688_s8, %s3458_s7  ;;  %p3463_p12 = scmp.lt.u32.totalorder %s4688_s8, %s4739_s5 }
 0xa6e   : > { %p3464_p8 = scmp.lt.u32.totalorder %s3462_s2, %s3458_s7  ;;  %p3466_p3 = scmp.lt.u32.totalorder %s3458_s7, %s4688_s8 }
 0xa6f   : > { %p3460_p5 = pnand %p3459_p4, %p4792_p7 }
 0xa70   : > { %p3465_p11 = por %p3464_p8, %p3463_p12 }
 0xa71   : > { %p3461_p10 = pneg %p3460_p5 }
 0xa72   : > { %p3467_p13 = por %p3466_p3, %p3465_p11 }
 0xa74   : > { %p3468_p1 = pnand %p3467_p13, %p3461_p10 }
 0xa76   : > { %3471 = shalt.err (!%p3468_p1)
}
 0xa77   : > { %s3533_s26 = smov 128   ;;  %s3534_s16 = smov 8   ;;  %v2938_v27 = vpop.f32.mrb[63].mxu1 }
 0xa78   : > { %2951 = dma.vmem_to_hbm [thread:$0]  (%p4792_p7), %s4690_s24, 1024, %s4688_s8, %s2349_s14, %s3533_s26, %s3533_s26, %s3534_s16  }
 0xa79 PF: > { %s2377_s11 = sand.u32 1, %s3506_s18   ;;  %p4793_p0 = scmp.ne.s32.totalorder %s4770_s9, 0 }
 0xa7a   : > { %p4794_p6 = scmp.ge.s32.totalorder %s3518_s21, 2  ;;  %s2378_s17 = scalar_lea.sflag [#allocation5], %s2377_s11 }
 0xa7c   : > { %p2971_p2 = pnand %p4794_p6, %p4793_p0 }
 0xa7e   : > { %3501 = dma.done.wait (!%p2971_p2), %s2378_s17, 1024  }
 0xa7f   : > { %3503 = vsyncadd (!%p2971_p2), %s2378_s17, 4294966272  ;;  %s4795_s23 = sld [smem:[#allocation17_spill]]  ;;  %s4796_s20 = sld [smem:[#allocation18_spill]] }
 0xa80   : > { %p22_p9 = scmp.ge.s32.totalorder %s3586_s22, 4   ;;  %s4797_s18 = smov %s3510_s19 }
 0xa81   : > { %s4799_s21 = smov %s3586_s22 }
 0xa82   :  { %24 = sbr.rel (!%p22_p9) target bundleno = 12 (0xc), region = 141 }
 0xa85   : > { %s4798_s19 = smov %s4795_s23 }
 0xa89   :  { %2383 = vsyncpa [#allocation4], 1 }
 0xa8a   :  { %2385 = vsyncpa [#allocation4 + $0x1], 1 }
 0xa8b   :  { %2386 = vsyncpa [#allocation7], 1 }
 0xa8c   :  { %2388 = vsyncpa [#allocation7 + $0x1], 1 }
 0xa8d   :  { %2389 = vsyncpa [#allocation10], 1 }
 0xa8e   :  { %2391 = vsyncpa [#allocation10 + $0x1], 1 }
 0xa8f   :  { %2392 = vsyncpa [#allocation5], 1 }
 0xa90   :  { %2394 = vsyncpa [#allocation5 + $0x1], 1 }

</bundles_post_ra>
